<compile_context>
chip_gen: v7x
topology: tpu7x:2x2x1
jax: 0.10.0
libtpu: 0.0.40
codegen_flags: <defaults>
</compile_context>

<pallas_src>
import functools

import jax
import jax.numpy as jnp
import numpy as np
from jax.experimental import pallas as pl
from jax.experimental.pallas import tpu as pltpu

BN_EPS = 1e-5
DROPOUT_RATE = 0.2
LANE = 128


def _rpad(n, m=LANE):
    return ((n + m - 1) // m) * m


def _pad2(a, rows, cols):
    return jnp.pad(a, ((0, rows - a.shape[0]), (0, cols - a.shape[1])))


# ---------------------------------------------------------------------------
# Kernel: one grid step == `groups` complete BatchNorm batches of bn_rows rows.
# ---------------------------------------------------------------------------
def vae_kernel(n_hidden, groups, bn_rows, lat_pad, mask_slices, *refs):
    idx = 0
    x_ref = refs[idx]; idx += 1
    enc = [(refs[idx + 2 * i], refs[idx + 2 * i + 1]) for i in range(n_hidden)]
    idx += 2 * n_hidden
    head_w, head_v = refs[idx], refs[idx + 1]; idx += 2      # fused mu|logvar head
    eps_ref = refs[idx]; idx += 1
    mask_ref = None
    if mask_slices is not None:
        mask_ref = refs[idx]; idx += 1
    dec = [(refs[idx + 2 * i], refs[idx + 2 * i + 1]) for i in range(n_hidden)]
    idx += 2 * n_hidden
    out_w, out_v = refs[idx], refs[idx + 1]; idx += 2
    recon_ref, stats_ref = refs[idx], refs[idx + 1]

    layer_counter = [0]   # which dropout layer we are on (static Python)

    def linear(h, w_ref, bias):
        w = w_ref[...]
        # bf16 (or f32) MXU inputs, f32 accumulate; elementwise math stays f32.
        return jnp.dot(h.astype(w.dtype), w,
                       preferred_element_type=jnp.float32) + bias

    def block(h, w_ref, vec_ref):
        vec = vec_ref[...]                       # rows: 0=bias, 1=gamma, 2=beta
        h = linear(h, w_ref, vec[0:1, :])
        c = h.shape[1]
        # Group-wise BatchNorm1d (training, biased variance): each group of
        # bn_rows rows is one BN batch -> sublane reduce over axis=1.
        hg = h.reshape(groups, bn_rows, c)
        m1 = jnp.mean(hg, axis=1, keepdims=True)
        m2 = jnp.mean(hg * hg, axis=1, keepdims=True)
        var = jnp.maximum(m2 - m1 * m1, 0.0)
        hg = (hg - m1) * jax.lax.rsqrt(var + BN_EPS)
        h = hg.reshape(groups * bn_rows, c) * vec[1:2, :] + vec[2:3, :]
        h = jnp.maximum(h, 0.0)                  # ReLU
        if mask_ref is not None:                 # Dropout (pre-scaled mask)
            start, width = mask_slices[layer_counter[0]]
            layer_counter[0] += 1
            h = h * mask_ref[:, start:start + width]
        return h

    # ---- encode ----
    h = x_ref[...]
    for (w, v) in enc:
        h = block(h, w, v)
    head = linear(h, head_w, head_v[0:1, :])     # one MXU push for mu AND logvar
    mu = head[:, :lat_pad]
    logvar = head[:, lat_pad:]

    # ---- reparameterize ----
    z = mu + eps_ref[...] * jnp.exp(0.5 * logvar)

    # ---- decode ----
    d = z
    for (w, v) in dec:
        d = block(d, w, v)
    recon = linear(d, out_w, out_v[0:1, :])

    # Lane-dense stores: full-width recon slab + one packed [mu|logvar|z] slab.
    recon_ref[...] = recon
    stats_ref[:, 0:lat_pad] = mu
    stats_ref[:, lat_pad:2 * lat_pad] = logvar
    stats_ref[:, 2 * lat_pad:3 * lat_pad] = z


# ---------------------------------------------------------------------------
# One-time parameter padding / packing (run outside the per-step forward).
# ---------------------------------------------------------------------------
def prepare_params(params, compute_dtype=jnp.float32):
    input_dim = params["out_w"].shape[1]
    latent_dim = params["mu_w"].shape[1]
    in_pad = _rpad(input_dim)
    lat_pad = _rpad(latent_dim)

    def pack_vec(b, g, be, hp):
        # bias / gamma / beta packed into ONE resident [8, hp] array (rows 0..2).
        v = jnp.zeros((8, hp), jnp.float32)
        v = v.at[0, :b.shape[1]].set(b[0])
        v = v.at[1, :g.shape[1]].set(g[0])
        v = v.at[2, :be.shape[1]].set(be[0])
        return v

    enc, prev = [], in_pad
    for (w, b, g, be) in params["enc"]:
        hp = _rpad(w.shape[1])
        enc.append((_pad2(w, prev, hp).astype(compute_dtype),
                    pack_vec(b, g, be, hp)))
        prev = hp

    head_w = jnp.concatenate(
        [_pad2(params["mu_w"], prev, lat_pad),
         _pad2(params["lv_w"], prev, lat_pad)], axis=1).astype(compute_dtype)
    head_v = jnp.zeros((8, 2 * lat_pad), jnp.float32)
    head_v = head_v.at[0, :latent_dim].set(params["mu_b"][0])
    head_v = head_v.at[0, lat_pad:lat_pad + latent_dim].set(params["lv_b"][0])

    dec, prev = [], lat_pad
    for (w, b, g, be) in params["dec"]:
        hp = _rpad(w.shape[1])
        dec.append((_pad2(w, prev, hp).astype(compute_dtype),
                    pack_vec(b, g, be, hp)))
        prev = hp

    out_w = _pad2(params["out_w"], prev, in_pad).astype(compute_dtype)
    out_v = jnp.zeros((8, in_pad), jnp.float32).at[0, :input_dim].set(
        params["out_b"][0])

    return dict(enc=enc, dec=dec, head_w=head_w, head_v=head_v,
                out_w=out_w, out_v=out_v)


# ---------------------------------------------------------------------------
# Jitted forward wrapper.
# ---------------------------------------------------------------------------
@functools.partial(jax.jit, static_argnames=(
    "input_dim", "latent_dim", "bn_batch", "groups_per_step"))
def microbiome_vae_forward(x, packed, eps, dropout_masks, *,
                           input_dim, latent_dim, bn_batch, groups_per_step):
    total = x.shape[0]
    rows_per_step = bn_batch * groups_per_step
    assert total % rows_per_step == 0, "rows must be a whole number of grid steps"
    nb = total // rows_per_step

    n_hidden = len(packed["enc"])
    in_pad = packed["out_w"].shape[1]
    lat_pad = packed["head_w"].shape[1] // 2

    per_step = lambda i: (i, 0)
    resident = lambda i: (0, 0)

    inputs, in_specs = [], []

    def add(a, block_shape, imap):
        inputs.append(a)
        in_specs.append(pl.BlockSpec(block_shape, imap))

    add(_pad2(x.astype(jnp.float32), total, in_pad),
        (rows_per_step, in_pad), per_step)

    for (w, v) in packed["enc"]:
        add(w, w.shape, resident)
        add(v, v.shape, resident)
    add(packed["head_w"], packed["head_w"].shape, resident)
    add(packed["head_v"], packed["head_v"].shape, resident)

    add(_pad2(eps.astype(jnp.float32), total, lat_pad),
        (rows_per_step, lat_pad), per_step)

    mask_slices = None
    if dropout_masks is not None:
        widths = ([w.shape[1] for (w, _) in packed["enc"]] +
                  [w.shape[1] for (w, _) in packed["dec"]])
        offs = np.cumsum([0] + widths)
        mask_slices = tuple((int(offs[i]), int(widths[i]))
                            for i in range(len(widths)))
        assert dropout_masks.shape == (total, int(offs[-1]))
        add(dropout_masks.astype(jnp.float32),
            (rows_per_step, dropout_masks.shape[1]), per_step)

    for (w, v) in packed["dec"]:
        add(w, w.shape, resident)
        add(v, v.shape, resident)
    add(packed["out_w"], packed["out_w"].shape, resident)
    add(packed["out_v"], packed["out_v"].shape, resident)

    out_shapes = (jax.ShapeDtypeStruct((total, in_pad), jnp.float32),
                  jax.ShapeDtypeStruct((total, 3 * lat_pad), jnp.float32))
    out_specs = (pl.BlockSpec((rows_per_step, in_pad), per_step),
                 pl.BlockSpec((rows_per_step, 3 * lat_pad), per_step))

    grid_spec = pltpu.PrefetchScalarGridSpec(
        num_scalar_prefetch=0,
        grid=(nb,),
        in_specs=in_specs,
        out_specs=out_specs,
    )

    recon_p, stats = pl.pallas_call(
        functools.partial(vae_kernel, n_hidden, groups_per_step, bn_batch,
                          lat_pad, mask_slices),
        out_shape=out_shapes,
        grid_spec=grid_spec,
        compiler_params=pltpu.CompilerParams(
            dimension_semantics=("parallel",),      # v7x: split steps across 2 TCs
            vmem_limit_bytes=32 * 1024 * 1024,
        ),
    )(*inputs)

    recon = recon_p[:, :input_dim]
    mu = stats[:, 0:latent_dim]
    logvar = stats[:, lat_pad:lat_pad + latent_dim]
    z = stats[:, 2 * lat_pad:2 * lat_pad + latent_dim]
    return recon, mu, logvar, z


# ---------------------------------------------------------------------------
# Host-side dropout masks (pre-scaled by 1/keep_prob, lane-padded, packed).
# ---------------------------------------------------------------------------
def make_dropout_masks(key, total, widths_logical, widths_padded, rate):
    keep = 1.0 - rate
    keys = jax.random.split(key, len(widths_logical))
    cols = []
    for k, wl, wp in zip(keys, widths_logical, widths_padded):
        m = jax.random.bernoulli(k, keep, (total, wl)).astype(jnp.float32) / keep
        cols.append(_pad2(m, total, wp))
    return jnp.concatenate(cols, axis=1)


# ---------------------------------------------------------------------------
# Deterministic parameter construction + pure-JAX reference (dropout disabled)
# ---------------------------------------------------------------------------
def make_params(key, input_dim, latent_dim, hidden_dims):
    def linear(k, din, dout):
        kw, kb = jax.random.split(k)
        bound = 1.0 / np.sqrt(din)
        w = jax.random.uniform(kw, (din, dout), jnp.float32, -bound, bound)
        b = jax.random.uniform(kb, (1, dout), jnp.float32, -bound, bound)
        return w, b

    keys = jax.random.split(key, 2 * len(hidden_dims) + 3)
    ki = iter(keys)

    enc = []
    prev = input_dim
    for h in hidden_dims:
        w, b = linear(next(ki), prev, h)
        enc.append((w, b, jnp.ones((1, h), jnp.float32),
                    jnp.zeros((1, h), jnp.float32)))
        prev = h

    mu_w, mu_b = linear(next(ki), prev, latent_dim)
    lv_w, lv_b = linear(next(ki), prev, latent_dim)

    dec = []
    prev = latent_dim
    for h in reversed(hidden_dims):
        w, b = linear(next(ki), prev, h)
        dec.append((w, b, jnp.ones((1, h), jnp.float32),
                    jnp.zeros((1, h), jnp.float32)))
        prev = h
    out_w, out_b = linear(next(ki), prev, input_dim)

    return dict(enc=enc, dec=dec, mu_w=mu_w, mu_b=mu_b,
                lv_w=lv_w, lv_b=lv_b, out_w=out_w, out_b=out_b)


def reference_forward(x, params, eps):
    """Pure-JAX reference of the same math, with dropout p=0 (for exact check)."""
    def block(h, layer):
        w, b, g, be = layer
        h = h @ w + b
        m1 = jnp.mean(h, axis=0, keepdims=True)
        m2 = jnp.mean(h * h, axis=0, keepdims=True)
        var = jnp.maximum(m2 - m1 * m1, 0.0)
        h = (h - m1) * jax.lax.rsqrt(var + BN_EPS) * g + be
        return jnp.maximum(h, 0.0)

    h = x
    for lyr in params["enc"]:
        h = block(h, lyr)
    mu = h @ params["mu_w"] + params["mu_b"]
    logvar = h @ params["lv_w"] + params["lv_b"]
    z = mu + eps * jnp.exp(0.5 * logvar)
    d = z
    for lyr in params["dec"]:
        d = block(d, lyr)
    recon = d @ params["out_w"] + params["out_b"]
    return recon, mu, logvar, z


if __name__ == "__main__":
    BN = 8              # BatchNorm batch (the module's batch size)
    GROUPS = 2          # BN batches packed per grid step (fattens matmul M)
    STEPS = 2           # grid length kept >= 2 for v7x megacore sharding
    total = BN * GROUPS * STEPS
    input_dim = 256
    hidden_dims = [128, 64]
    latent_dim = 32

    key = jax.random.PRNGKey(0)
    k_x, k_p, k_eps, k_m = jax.random.split(key, 4)
    x = jax.random.uniform(k_x, (total, input_dim), jnp.float32)
    params = make_params(k_p, input_dim, latent_dim, hidden_dims)
    eps = jax.random.normal(k_eps, (total, latent_dim), jnp.float32)

    # 1) Exact numerical check with dropout disabled: kernel (f32 weights) vs
    #    pure-JAX reference, with BN statistics per BN-batch exactly like the
    #    per-group reshape inside the kernel.
    packed_f32 = prepare_params(params, compute_dtype=jnp.float32)
    got0 = microbiome_vae_forward(
        x, packed_f32, eps, None,
        input_dim=input_dim, latent_dim=latent_dim,
        bn_batch=BN, groups_per_step=GROUPS)
    jax.block_until_ready(got0)
    nbatch = total // BN
    parts = [reference_forward(x[i * BN:(i + 1) * BN], params,
                               eps[i * BN:(i + 1) * BN]) for i in range(nbatch)]
    ref0 = tuple(jnp.concatenate([p[j] for p in parts], axis=0) for j in range(4))
    for g, r in zip(got0, ref0):
        np.testing.assert_allclose(np.asarray(g), np.asarray(r),
                                   rtol=2e-4, atol=2e-4)

    # 2) Training-mode forward: dropout masks active, bf16 MXU inputs
    #    (f32 accumulate / f32 elementwise).
    widths_logical = list(hidden_dims) + list(reversed(hidden_dims))
    widths_padded = [_rpad(w) for w in widths_logical]
    masks = make_dropout_masks(k_m, total, widths_logical, widths_padded,
                               DROPOUT_RATE)
    packed_bf16 = prepare_params(params, compute_dtype=jnp.bfloat16)
    recon, mu, logvar, z = microbiome_vae_forward(
        x, packed_bf16, eps, masks,
        input_dim=input_dim, latent_dim=latent_dim,
        bn_batch=BN, groups_per_step=GROUPS)
    jax.block_until_ready((recon, mu, logvar, z))
    assert recon.shape == (total, input_dim)
    assert mu.shape == logvar.shape == z.shape == (total, latent_dim)
    for a in (recon, mu, logvar, z):
        assert np.isfinite(np.asarray(a)).all()

    print("KERNEL_OK")
</pallas_src>

<mosaic_0001>
module attributes {stable_mosaic.version = 11 : i64} {
  func.func @vae_kernel(%arg0: i32, %arg1: memref<16x256xf32, #tpu.memory_space<vmem>>, %arg2: memref<256x128xf32, #tpu.memory_space<vmem>>, %arg3: memref<8x128xf32, #tpu.memory_space<vmem>>, %arg4: memref<128x128xf32, #tpu.memory_space<vmem>>, %arg5: memref<8x128xf32, #tpu.memory_space<vmem>>, %arg6: memref<128x256xf32, #tpu.memory_space<vmem>>, %arg7: memref<8x256xf32, #tpu.memory_space<vmem>>, %arg8: memref<16x128xf32, #tpu.memory_space<vmem>>, %arg9: memref<128x128xf32, #tpu.memory_space<vmem>>, %arg10: memref<8x128xf32, #tpu.memory_space<vmem>>, %arg11: memref<128x128xf32, #tpu.memory_space<vmem>>, %arg12: memref<8x128xf32, #tpu.memory_space<vmem>>, %arg13: memref<128x256xf32, #tpu.memory_space<vmem>>, %arg14: memref<8x256xf32, #tpu.memory_space<vmem>>, %arg15: memref<16x256xf32, #tpu.memory_space<vmem>>, %arg16: memref<16x384xf32, #tpu.memory_space<vmem>>) attributes {dimension_semantics = [#tpu.dimension_semantics<parallel>], iteration_bounds = array<i64: 2>, scalar_prefetch = 0 : i64, scratch_operands = 0 : i64, tpu.core_type = #tpu.core_type<tc>, window_params = [{transform_indices = @transform_0, window_bounds = array<i64: 16, 256>}, {pipeline_mode = #tpu.pipeline_mode<synchronous>, transform_indices = @transform_1, window_bounds = array<i64: 256, 128>}, {pipeline_mode = #tpu.pipeline_mode<synchronous>, transform_indices = @transform_2, window_bounds = array<i64: 8, 128>}, {pipeline_mode = #tpu.pipeline_mode<synchronous>, transform_indices = @transform_3, window_bounds = array<i64: 128, 128>}, {pipeline_mode = #tpu.pipeline_mode<synchronous>, transform_indices = @transform_4, window_bounds = array<i64: 8, 128>}, {pipeline_mode = #tpu.pipeline_mode<synchronous>, transform_indices = @transform_5, window_bounds = array<i64: 128, 256>}, {pipeline_mode = #tpu.pipeline_mode<synchronous>, transform_indices = @transform_6, window_bounds = array<i64: 8, 256>}, {transform_indices = @transform_7, window_bounds = array<i64: 16, 128>}, {pipeline_mode = #tpu.pipeline_mode<synchronous>, transform_indices = @transform_8, window_bounds = array<i64: 128, 128>}, {pipeline_mode = #tpu.pipeline_mode<synchronous>, transform_indices = @transform_9, window_bounds = array<i64: 8, 128>}, {pipeline_mode = #tpu.pipeline_mode<synchronous>, transform_indices = @transform_10, window_bounds = array<i64: 128, 128>}, {pipeline_mode = #tpu.pipeline_mode<synchronous>, transform_indices = @transform_11, window_bounds = array<i64: 8, 128>}, {pipeline_mode = #tpu.pipeline_mode<synchronous>, transform_indices = @transform_12, window_bounds = array<i64: 128, 256>}, {pipeline_mode = #tpu.pipeline_mode<synchronous>, transform_indices = @transform_13, window_bounds = array<i64: 8, 256>}, {transform_indices = @transform_14, window_bounds = array<i64: 16, 256>}, {transform_indices = @transform_15, window_bounds = array<i64: 16, 384>}]} {
    %c0 = arith.constant 0 : index
    %c0_0 = arith.constant 0 : index
    %0 = vector.load %arg1[%c0, %c0_0] : memref<16x256xf32, #tpu.memory_space<vmem>>, vector<16x256xf32>
    %c0_1 = arith.constant 0 : index
    %c0_2 = arith.constant 0 : index
    %1 = vector.load %arg3[%c0_1, %c0_2] : memref<8x128xf32, #tpu.memory_space<vmem>>, vector<8x128xf32>
    %2 = vector.extract_strided_slice %1 {offsets = [0, 0], sizes = [1, 128], strides = [1, 1]} : vector<8x128xf32> to vector<1x128xf32>
    %c0_3 = arith.constant 0 : index
    %c0_4 = arith.constant 0 : index
    %3 = vector.load %arg2[%c0_3, %c0_4] : memref<256x128xf32, #tpu.memory_space<vmem>>, vector<256x128xf32>
    %cst = arith.constant dense<0.000000e+00> : vector<16x128xf32>
    %4 = tpu.matmul %0, %3, %cst {dimension_numbers = #tpu.dot_dimension_numbers<[1], [0], [0], [1], [0, 0, 1, 1], [], []>} : vector<16x256xf32>, vector<256x128xf32>, vector<16x128xf32> -> vector<16x128xf32>
    %5 = vector.broadcast %2 : vector<1x128xf32> to vector<16x128xf32>
    %6 = arith.addf %4, %5 : vector<16x128xf32>
    %7 = vector.shape_cast %6 : vector<16x128xf32> to vector<2x8x128xf32>
    %cst_5 = arith.constant dense<0.000000e+00> : vector<2x128xf32>
    %8 = vector.multi_reduction <add>, %7, %cst_5 [1] : vector<2x8x128xf32> to vector<2x128xf32>
    %9 = vector.shape_cast %8 : vector<2x128xf32> to vector<2x1x128xf32>
    %cst_6 = arith.constant 8.000000e+00 : f32
    %10 = vector.broadcast %cst_6 : f32 to vector<2x1x128xf32>
    %11 = arith.divf %9, %10 : vector<2x1x128xf32>
    %12 = arith.mulf %7, %7 : vector<2x8x128xf32>
    %cst_7 = arith.constant dense<0.000000e+00> : vector<2x128xf32>
    %13 = vector.multi_reduction <add>, %12, %cst_7 [1] : vector<2x8x128xf32> to vector<2x128xf32>
    %14 = vector.shape_cast %13 : vector<2x128xf32> to vector<2x1x128xf32>
    %cst_8 = arith.constant 8.000000e+00 : f32
    %15 = vector.broadcast %cst_8 : f32 to vector<2x1x128xf32>
    %16 = arith.divf %14, %15 : vector<2x1x128xf32>
    %17 = arith.mulf %11, %11 : vector<2x1x128xf32>
    %18 = arith.subf %16, %17 : vector<2x1x128xf32>
    %cst_9 = arith.constant 0.000000e+00 : f32
    %19 = vector.broadcast %cst_9 : f32 to vector<2x1x128xf32>
    %20 = arith.maximumf %18, %19 : vector<2x1x128xf32>
    %21 = vector.broadcast %11 : vector<2x1x128xf32> to vector<2x8x128xf32>
    %22 = arith.subf %7, %21 : vector<2x8x128xf32>
    %cst_10 = arith.constant 9.99999974E-6 : f32
    %23 = vector.broadcast %cst_10 : f32 to vector<2x1x128xf32>
    %24 = arith.addf %20, %23 : vector<2x1x128xf32>
    %25 = math.rsqrt %24 : vector<2x1x128xf32>
    %26 = vector.broadcast %25 : vector<2x1x128xf32> to vector<2x8x128xf32>
    %27 = arith.mulf %22, %26 : vector<2x8x128xf32>
    %28 = vector.shape_cast %27 : vector<2x8x128xf32> to vector<16x128xf32>
    %29 = vector.extract_strided_slice %1 {offsets = [1, 0], sizes = [1, 128], strides = [1, 1]} : vector<8x128xf32> to vector<1x128xf32>
    %30 = vector.broadcast %29 : vector<1x128xf32> to vector<16x128xf32>
    %31 = arith.mulf %28, %30 : vector<16x128xf32>
    %32 = vector.extract_strided_slice %1 {offsets = [2, 0], sizes = [1, 128], strides = [1, 1]} : vector<8x128xf32> to vector<1x128xf32>
    %33 = vector.broadcast %32 : vector<1x128xf32> to vector<16x128xf32>
    %34 = arith.addf %31, %33 : vector<16x128xf32>
    %cst_11 = arith.constant 0.000000e+00 : f32
    %35 = vector.broadcast %cst_11 : f32 to vector<16x128xf32>
    %36 = arith.maximumf %34, %35 : vector<16x128xf32>
    %c0_12 = arith.constant 0 : index
    %c0_13 = arith.constant 0 : index
    %37 = vector.load %arg5[%c0_12, %c0_13] : memref<8x128xf32, #tpu.memory_space<vmem>>, vector<8x128xf32>
    %38 = vector.extract_strided_slice %37 {offsets = [0, 0], sizes = [1, 128], strides = [1, 1]} : vector<8x128xf32> to vector<1x128xf32>
    %c0_14 = arith.constant 0 : index
    %c0_15 = arith.constant 0 : index
    %39 = vector.load %arg4[%c0_14, %c0_15] : memref<128x128xf32, #tpu.memory_space<vmem>>, vector<128x128xf32>
    %cst_16 = arith.constant dense<0.000000e+00> : vector<16x128xf32>
    %40 = tpu.matmul %36, %39, %cst_16 {dimension_numbers = #tpu.dot_dimension_numbers<[1], [0], [0], [1], [0, 0, 1, 1], [], []>} : vector<16x128xf32>, vector<128x128xf32>, vector<16x128xf32> -> vector<16x128xf32>
    %41 = vector.broadcast %38 : vector<1x128xf32> to vector<16x128xf32>
    %42 = arith.addf %40, %41 : vector<16x128xf32>
    %43 = vector.shape_cast %42 : vector<16x128xf32> to vector<2x8x128xf32>
    %cst_17 = arith.constant dense<0.000000e+00> : vector<2x128xf32>
    %44 = vector.multi_reduction <add>, %43, %cst_17 [1] : vector<2x8x128xf32> to vector<2x128xf32>
    %45 = vector.shape_cast %44 : vector<2x128xf32> to vector<2x1x128xf32>
    %cst_18 = arith.constant 8.000000e+00 : f32
    %46 = vector.broadcast %cst_18 : f32 to vector<2x1x128xf32>
    %47 = arith.divf %45, %46 : vector<2x1x128xf32>
    %48 = arith.mulf %43, %43 : vector<2x8x128xf32>
    %cst_19 = arith.constant dense<0.000000e+00> : vector<2x128xf32>
    %49 = vector.multi_reduction <add>, %48, %cst_19 [1] : vector<2x8x128xf32> to vector<2x128xf32>
    %50 = vector.shape_cast %49 : vector<2x128xf32> to vector<2x1x128xf32>
    %cst_20 = arith.constant 8.000000e+00 : f32
    %51 = vector.broadcast %cst_20 : f32 to vector<2x1x128xf32>
    %52 = arith.divf %50, %51 : vector<2x1x128xf32>
    %53 = arith.mulf %47, %47 : vector<2x1x128xf32>
    %54 = arith.subf %52, %53 : vector<2x1x128xf32>
    %cst_21 = arith.constant 0.000000e+00 : f32
    %55 = vector.broadcast %cst_21 : f32 to vector<2x1x128xf32>
    %56 = arith.maximumf %54, %55 : vector<2x1x128xf32>
    %57 = vector.broadcast %47 : vector<2x1x128xf32> to vector<2x8x128xf32>
    %58 = arith.subf %43, %57 : vector<2x8x128xf32>
    %cst_22 = arith.constant 9.99999974E-6 : f32
    %59 = vector.broadcast %cst_22 : f32 to vector<2x1x128xf32>
    %60 = arith.addf %56, %59 : vector<2x1x128xf32>
    %61 = math.rsqrt %60 : vector<2x1x128xf32>
    %62 = vector.broadcast %61 : vector<2x1x128xf32> to vector<2x8x128xf32>
    %63 = arith.mulf %58, %62 : vector<2x8x128xf32>
    %64 = vector.shape_cast %63 : vector<2x8x128xf32> to vector<16x128xf32>
    %65 = vector.extract_strided_slice %37 {offsets = [1, 0], sizes = [1, 128], strides = [1, 1]} : vector<8x128xf32> to vector<1x128xf32>
    %66 = vector.broadcast %65 : vector<1x128xf32> to vector<16x128xf32>
    %67 = arith.mulf %64, %66 : vector<16x128xf32>
    %68 = vector.extract_strided_slice %37 {offsets = [2, 0], sizes = [1, 128], strides = [1, 1]} : vector<8x128xf32> to vector<1x128xf32>
    %69 = vector.broadcast %68 : vector<1x128xf32> to vector<16x128xf32>
    %70 = arith.addf %67, %69 : vector<16x128xf32>
    %cst_23 = arith.constant 0.000000e+00 : f32
    %71 = vector.broadcast %cst_23 : f32 to vector<16x128xf32>
    %72 = arith.maximumf %70, %71 : vector<16x128xf32>
    %c0_24 = arith.constant 0 : index
    %c0_25 = arith.constant 0 : index
    %73 = vector.load %arg7[%c0_24, %c0_25] : memref<8x256xf32, #tpu.memory_space<vmem>>, vector<1x256xf32>
    %c0_26 = arith.constant 0 : index
    %c0_27 = arith.constant 0 : index
    %74 = vector.load %arg6[%c0_26, %c0_27] : memref<128x256xf32, #tpu.memory_space<vmem>>, vector<128x256xf32>
    %cst_28 = arith.constant dense<0.000000e+00> : vector<16x256xf32>
    %75 = tpu.matmul %72, %74, %cst_28 {dimension_numbers = #tpu.dot_dimension_numbers<[1], [0], [0], [1], [0, 0, 1, 1], [], []>} : vector<16x128xf32>, vector<128x256xf32>, vector<16x256xf32> -> vector<16x256xf32>
    %76 = vector.broadcast %73 : vector<1x256xf32> to vector<16x256xf32>
    %77 = arith.addf %75, %76 : vector<16x256xf32>
    %78 = vector.extract_strided_slice %77 {offsets = [0, 0], sizes = [16, 128], strides = [1, 1]} : vector<16x256xf32> to vector<16x128xf32>
    %79 = vector.extract_strided_slice %77 {offsets = [0, 128], sizes = [16, 128], strides = [1, 1]} : vector<16x256xf32> to vector<16x128xf32>
    %c0_29 = arith.constant 0 : index
    %c0_30 = arith.constant 0 : index
    %80 = vector.load %arg8[%c0_29, %c0_30] : memref<16x128xf32, #tpu.memory_space<vmem>>, vector<16x128xf32>
    %cst_31 = arith.constant 5.000000e-01 : f32
    %81 = vector.broadcast %cst_31 : f32 to vector<16x128xf32>
    %82 = arith.mulf %81, %79 : vector<16x128xf32>
    %83 = math.exp %82 : vector<16x128xf32>
    %84 = arith.mulf %80, %83 : vector<16x128xf32>
    %85 = arith.addf %78, %84 : vector<16x128xf32>
    %c0_32 = arith.constant 0 : index
    %c0_33 = arith.constant 0 : index
    %86 = vector.load %arg10[%c0_32, %c0_33] : memref<8x128xf32, #tpu.memory_space<vmem>>, vector<8x128xf32>
    %87 = vector.extract_strided_slice %86 {offsets = [0, 0], sizes = [1, 128], strides = [1, 1]} : vector<8x128xf32> to vector<1x128xf32>
    %c0_34 = arith.constant 0 : index
    %c0_35 = arith.constant 0 : index
    %88 = vector.load %arg9[%c0_34, %c0_35] : memref<128x128xf32, #tpu.memory_space<vmem>>, vector<128x128xf32>
    %cst_36 = arith.constant dense<0.000000e+00> : vector<16x128xf32>
    %89 = tpu.matmul %85, %88, %cst_36 {dimension_numbers = #tpu.dot_dimension_numbers<[1], [0], [0], [1], [0, 0, 1, 1], [], []>} : vector<16x128xf32>, vector<128x128xf32>, vector<16x128xf32> -> vector<16x128xf32>
    %90 = vector.broadcast %87 : vector<1x128xf32> to vector<16x128xf32>
    %91 = arith.addf %89, %90 : vector<16x128xf32>
    %92 = vector.shape_cast %91 : vector<16x128xf32> to vector<2x8x128xf32>
    %cst_37 = arith.constant dense<0.000000e+00> : vector<2x128xf32>
    %93 = vector.multi_reduction <add>, %92, %cst_37 [1] : vector<2x8x128xf32> to vector<2x128xf32>
    %94 = vector.shape_cast %93 : vector<2x128xf32> to vector<2x1x128xf32>
    %cst_38 = arith.constant 8.000000e+00 : f32
    %95 = vector.broadcast %cst_38 : f32 to vector<2x1x128xf32>
    %96 = arith.divf %94, %95 : vector<2x1x128xf32>
    %97 = arith.mulf %92, %92 : vector<2x8x128xf32>
    %cst_39 = arith.constant dense<0.000000e+00> : vector<2x128xf32>
    %98 = vector.multi_reduction <add>, %97, %cst_39 [1] : vector<2x8x128xf32> to vector<2x128xf32>
    %99 = vector.shape_cast %98 : vector<2x128xf32> to vector<2x1x128xf32>
    %cst_40 = arith.constant 8.000000e+00 : f32
    %100 = vector.broadcast %cst_40 : f32 to vector<2x1x128xf32>
    %101 = arith.divf %99, %100 : vector<2x1x128xf32>
    %102 = arith.mulf %96, %96 : vector<2x1x128xf32>
    %103 = arith.subf %101, %102 : vector<2x1x128xf32>
    %cst_41 = arith.constant 0.000000e+00 : f32
    %104 = vector.broadcast %cst_41 : f32 to vector<2x1x128xf32>
    %105 = arith.maximumf %103, %104 : vector<2x1x128xf32>
    %106 = vector.broadcast %96 : vector<2x1x128xf32> to vector<2x8x128xf32>
    %107 = arith.subf %92, %106 : vector<2x8x128xf32>
    %cst_42 = arith.constant 9.99999974E-6 : f32
    %108 = vector.broadcast %cst_42 : f32 to vector<2x1x128xf32>
    %109 = arith.addf %105, %108 : vector<2x1x128xf32>
    %110 = math.rsqrt %109 : vector<2x1x128xf32>
    %111 = vector.broadcast %110 : vector<2x1x128xf32> to vector<2x8x128xf32>
    %112 = arith.mulf %107, %111 : vector<2x8x128xf32>
    %113 = vector.shape_cast %112 : vector<2x8x128xf32> to vector<16x128xf32>
    %114 = vector.extract_strided_slice %86 {offsets = [1, 0], sizes = [1, 128], strides = [1, 1]} : vector<8x128xf32> to vector<1x128xf32>
    %115 = vector.broadcast %114 : vector<1x128xf32> to vector<16x128xf32>
    %116 = arith.mulf %113, %115 : vector<16x128xf32>
    %117 = vector.extract_strided_slice %86 {offsets = [2, 0], sizes = [1, 128], strides = [1, 1]} : vector<8x128xf32> to vector<1x128xf32>
    %118 = vector.broadcast %117 : vector<1x128xf32> to vector<16x128xf32>
    %119 = arith.addf %116, %118 : vector<16x128xf32>
    %cst_43 = arith.constant 0.000000e+00 : f32
    %120 = vector.broadcast %cst_43 : f32 to vector<16x128xf32>
    %121 = arith.maximumf %119, %120 : vector<16x128xf32>
    %c0_44 = arith.constant 0 : index
    %c0_45 = arith.constant 0 : index
    %122 = vector.load %arg12[%c0_44, %c0_45] : memref<8x128xf32, #tpu.memory_space<vmem>>, vector<8x128xf32>
    %123 = vector.extract_strided_slice %122 {offsets = [0, 0], sizes = [1, 128], strides = [1, 1]} : vector<8x128xf32> to vector<1x128xf32>
    %c0_46 = arith.constant 0 : index
    %c0_47 = arith.constant 0 : index
    %124 = vector.load %arg11[%c0_46, %c0_47] : memref<128x128xf32, #tpu.memory_space<vmem>>, vector<128x128xf32>
    %cst_48 = arith.constant dense<0.000000e+00> : vector<16x128xf32>
    %125 = tpu.matmul %121, %124, %cst_48 {dimension_numbers = #tpu.dot_dimension_numbers<[1], [0], [0], [1], [0, 0, 1, 1], [], []>} : vector<16x128xf32>, vector<128x128xf32>, vector<16x128xf32> -> vector<16x128xf32>
    %126 = vector.broadcast %123 : vector<1x128xf32> to vector<16x128xf32>
    %127 = arith.addf %125, %126 : vector<16x128xf32>
    %128 = vector.shape_cast %127 : vector<16x128xf32> to vector<2x8x128xf32>
    %cst_49 = arith.constant dense<0.000000e+00> : vector<2x128xf32>
    %129 = vector.multi_reduction <add>, %128, %cst_49 [1] : vector<2x8x128xf32> to vector<2x128xf32>
    %130 = vector.shape_cast %129 : vector<2x128xf32> to vector<2x1x128xf32>
    %cst_50 = arith.constant 8.000000e+00 : f32
    %131 = vector.broadcast %cst_50 : f32 to vector<2x1x128xf32>
    %132 = arith.divf %130, %131 : vector<2x1x128xf32>
    %133 = arith.mulf %128, %128 : vector<2x8x128xf32>
    %cst_51 = arith.constant dense<0.000000e+00> : vector<2x128xf32>
    %134 = vector.multi_reduction <add>, %133, %cst_51 [1] : vector<2x8x128xf32> to vector<2x128xf32>
    %135 = vector.shape_cast %134 : vector<2x128xf32> to vector<2x1x128xf32>
    %cst_52 = arith.constant 8.000000e+00 : f32
    %136 = vector.broadcast %cst_52 : f32 to vector<2x1x128xf32>
    %137 = arith.divf %135, %136 : vector<2x1x128xf32>
    %138 = arith.mulf %132, %132 : vector<2x1x128xf32>
    %139 = arith.subf %137, %138 : vector<2x1x128xf32>
    %cst_53 = arith.constant 0.000000e+00 : f32
    %140 = vector.broadcast %cst_53 : f32 to vector<2x1x128xf32>
    %141 = arith.maximumf %139, %140 : vector<2x1x128xf32>
    %142 = vector.broadcast %132 : vector<2x1x128xf32> to vector<2x8x128xf32>
    %143 = arith.subf %128, %142 : vector<2x8x128xf32>
    %cst_54 = arith.constant 9.99999974E-6 : f32
    %144 = vector.broadcast %cst_54 : f32 to vector<2x1x128xf32>
    %145 = arith.addf %141, %144 : vector<2x1x128xf32>
    %146 = math.rsqrt %145 : vector<2x1x128xf32>
    %147 = vector.broadcast %146 : vector<2x1x128xf32> to vector<2x8x128xf32>
    %148 = arith.mulf %143, %147 : vector<2x8x128xf32>
    %149 = vector.shape_cast %148 : vector<2x8x128xf32> to vector<16x128xf32>
    %150 = vector.extract_strided_slice %122 {offsets = [1, 0], sizes = [1, 128], strides = [1, 1]} : vector<8x128xf32> to vector<1x128xf32>
    %151 = vector.broadcast %150 : vector<1x128xf32> to vector<16x128xf32>
    %152 = arith.mulf %149, %151 : vector<16x128xf32>
    %153 = vector.extract_strided_slice %122 {offsets = [2, 0], sizes = [1, 128], strides = [1, 1]} : vector<8x128xf32> to vector<1x128xf32>
    %154 = vector.broadcast %153 : vector<1x128xf32> to vector<16x128xf32>
    %155 = arith.addf %152, %154 : vector<16x128xf32>
    %cst_55 = arith.constant 0.000000e+00 : f32
    %156 = vector.broadcast %cst_55 : f32 to vector<16x128xf32>
    %157 = arith.maximumf %155, %156 : vector<16x128xf32>
    %c0_56 = arith.constant 0 : index
    %c0_57 = arith.constant 0 : index
    %158 = vector.load %arg14[%c0_56, %c0_57] : memref<8x256xf32, #tpu.memory_space<vmem>>, vector<1x256xf32>
    %c0_58 = arith.constant 0 : index
    %c0_59 = arith.constant 0 : index
    %159 = vector.load %arg13[%c0_58, %c0_59] : memref<128x256xf32, #tpu.memory_space<vmem>>, vector<128x256xf32>
    %cst_60 = arith.constant dense<0.000000e+00> : vector<16x256xf32>
    %160 = tpu.matmul %157, %159, %cst_60 {dimension_numbers = #tpu.dot_dimension_numbers<[1], [0], [0], [1], [0, 0, 1, 1], [], []>} : vector<16x128xf32>, vector<128x256xf32>, vector<16x256xf32> -> vector<16x256xf32>
    %161 = vector.broadcast %158 : vector<1x256xf32> to vector<16x256xf32>
    %162 = arith.addf %160, %161 : vector<16x256xf32>
    %c0_61 = arith.constant 0 : index
    %c0_62 = arith.constant 0 : index
    %163 = vector.load %arg15[%c0_61, %c0_62] : memref<16x256xf32, #tpu.memory_space<vmem>>, vector<16x256xf32>
    tpu.vector_store %arg15[%c0_61, %c0_62], %162 {strides = array<i32>} : memref<16x256xf32, #tpu.memory_space<vmem>>, vector<16x256xf32>,
    %c0_63 = arith.constant 0 : index
    %c0_64 = arith.constant 0 : index
    %164 = vector.load %arg16[%c0_63, %c0_64] : memref<16x384xf32, #tpu.memory_space<vmem>>, vector<16x128xf32>
    tpu.vector_store %arg16[%c0_63, %c0_64], %78 {strides = array<i32>} : memref<16x384xf32, #tpu.memory_space<vmem>>, vector<16x128xf32>,
    %c0_65 = arith.constant 0 : index
    %c128 = arith.constant 128 : index
    %165 = vector.load %arg16[%c0_65, %c128] : memref<16x384xf32, #tpu.memory_space<vmem>>, vector<16x128xf32>
    tpu.vector_store %arg16[%c0_65, %c128], %79 {strides = array<i32>} : memref<16x384xf32, #tpu.memory_space<vmem>>, vector<16x128xf32>,
    %c0_66 = arith.constant 0 : index
    %c256 = arith.constant 256 : index
    %166 = vector.load %arg16[%c0_66, %c256] : memref<16x384xf32, #tpu.memory_space<vmem>>, vector<16x128xf32>
    tpu.vector_store %arg16[%c0_66, %c256], %85 {strides = array<i32>} : memref<16x384xf32, #tpu.memory_space<vmem>>, vector<16x128xf32>,
    return
  }
  func.func @transform_0(%arg0: i32) -> (i32, i32) {
    %c0_i32 = arith.constant 0 : i32
    %c0_i32_0 = arith.constant 0 : i32
    return %arg0, %c0_i32 : i32, i32
  }
  func.func @transform_1(%arg0: i32) -> (i32, i32) {
    %c0_i32 = arith.constant 0 : i32
    %c0_i32_0 = arith.constant 0 : i32
    %c0_i32_1 = arith.constant 0 : i32
    return %c0_i32, %c0_i32_0 : i32, i32
  }
  func.func @transform_2(%arg0: i32) -> (i32, i32) {
    %c0_i32 = arith.constant 0 : i32
    %c0_i32_0 = arith.constant 0 : i32
    %c0_i32_1 = arith.constant 0 : i32
    return %c0_i32, %c0_i32_0 : i32, i32
  }
  func.func @transform_3(%arg0: i32) -> (i32, i32) {
    %c0_i32 = arith.constant 0 : i32
    %c0_i32_0 = arith.constant 0 : i32
    %c0_i32_1 = arith.constant 0 : i32
    return %c0_i32, %c0_i32_0 : i32, i32
  }
  func.func @transform_4(%arg0: i32) -> (i32, i32) {
    %c0_i32 = arith.constant 0 : i32
    %c0_i32_0 = arith.constant 0 : i32
    %c0_i32_1 = arith.constant 0 : i32
    return %c0_i32, %c0_i32_0 : i32, i32
  }
  func.func @transform_5(%arg0: i32) -> (i32, i32) {
    %c0_i32 = arith.constant 0 : i32
    %c0_i32_0 = arith.constant 0 : i32
    %c0_i32_1 = arith.constant 0 : i32
    return %c0_i32, %c0_i32_0 : i32, i32
  }
  func.func @transform_6(%arg0: i32) -> (i32, i32) {
    %c0_i32 = arith.constant 0 : i32
    %c0_i32_0 = arith.constant 0 : i32
    %c0_i32_1 = arith.constant 0 : i32
    return %c0_i32, %c0_i32_0 : i32, i32
  }
  func.func @transform_7(%arg0: i32) -> (i32, i32) {
    %c0_i32 = arith.constant 0 : i32
    %c0_i32_0 = arith.constant 0 : i32
    return %arg0, %c0_i32 : i32, i32
  }
  func.func @transform_8(%arg0: i32) -> (i32, i32) {
    %c0_i32 = arith.constant 0 : i32
    %c0_i32_0 = arith.constant 0 : i32
    %c0_i32_1 = arith.constant 0 : i32
    return %c0_i32, %c0_i32_0 : i32, i32
  }
  func.func @transform_9(%arg0: i32) -> (i32, i32) {
    %c0_i32 = arith.constant 0 : i32
    %c0_i32_0 = arith.constant 0 : i32
    %c0_i32_1 = arith.constant 0 : i32
    return %c0_i32, %c0_i32_0 : i32, i32
  }
  func.func @transform_10(%arg0: i32) -> (i32, i32) {
    %c0_i32 = arith.constant 0 : i32
    %c0_i32_0 = arith.constant 0 : i32
    %c0_i32_1 = arith.constant 0 : i32
    return %c0_i32, %c0_i32_0 : i32, i32
  }
  func.func @transform_11(%arg0: i32) -> (i32, i32) {
    %c0_i32 = arith.constant 0 : i32
    %c0_i32_0 = arith.constant 0 : i32
    %c0_i32_1 = arith.constant 0 : i32
    return %c0_i32, %c0_i32_0 : i32, i32
  }
  func.func @transform_12(%arg0: i32) -> (i32, i32) {
    %c0_i32 = arith.constant 0 : i32
    %c0_i32_0 = arith.constant 0 : i32
    %c0_i32_1 = arith.constant 0 : i32
    return %c0_i32, %c0_i32_0 : i32, i32
  }
  func.func @transform_13(%arg0: i32) -> (i32, i32) {
    %c0_i32 = arith.constant 0 : i32
    %c0_i32_0 = arith.constant 0 : i32
    %c0_i32_1 = arith.constant 0 : i32
    return %c0_i32, %c0_i32_0 : i32, i32
  }
  func.func @transform_14(%arg0: i32) -> (i32, i32) {
    %c0_i32 = arith.constant 0 : i32
    %c0_i32_0 = arith.constant 0 : i32
    return %arg0, %c0_i32 : i32, i32
  }
  func.func @transform_15(%arg0: i32) -> (i32, i32) {
    %c0_i32 = arith.constant 0 : i32
    %c0_i32_0 = arith.constant 0 : i32
    return %arg0, %c0_i32 : i32, i32
  }
}

</mosaic_0001>

<bundles_post_ra>
// kernel: microbiome_vae_forward.1
= control target key start
LH: loop header
LB: loop body
LE: loop exit
PB: predicated region body
PF: predicated region fallthrough
CT: control target
= control target key end

     0   :  { %s3373_s0 = inlined_call_operand.vmem [shape: f32[32,256], index: 0, kind: input, shape index: {}]   ;;  %s3374_s1 = inlined_call_operand.hbm [shape: f32[256,128], index: 1, kind: input, shape index: {}]   ;;  %s3375_s2 = inlined_call_operand.hbm [shape: f32[8,128], index: 2, kind: input, shape index: {}]   ;;  %s3376_s3 = inlined_call_operand.hbm [shape: f32[128,128], index: 3, kind: input, shape index: {}]   ;;  %s3377_s4 = inlined_call_operand.hbm [shape: f32[8,128], index: 4, kind: input, shape index: {}]   ;;  %s3378_s5 = inlined_call_operand.hbm [shape: f32[128,256], index: 5, kind: input, shape index: {}]   ;;  %s3379_s6 = inlined_call_operand.vmem [shape: f32[8,256], index: 6, kind: input, shape index: {}]   ;;  %s3380_s7 = inlined_call_operand.vmem [shape: f32[32,128], index: 7, kind: input, shape index: {}]   ;;  %s3381_s8 = inlined_call_operand.hbm [shape: f32[128,128], index: 8, kind: input, shape index: {}]   ;;  %s3382_s9 = inlined_call_operand.hbm [shape: f32[8,128], index: 9, kind: input, shape index: {}]   ;;  %s3383_s10 = inlined_call_operand.hbm [shape: f32[128,128], index: 10, kind: input, shape index: {}]   ;;  %s3384_s11 = inlined_call_operand.hbm [shape: f32[8,128], index: 11, kind: input, shape index: {}]   ;;  %s3385_s12 = inlined_call_operand.hbm [shape: f32[128,256], index: 12, kind: input, shape index: {}]   ;;  %s3386_s13 = inlined_call_operand.hbm [shape: f32[8,256], index: 13, kind: input, shape index: {}]   ;;  %s3387_s14 = inlined_call_operand.hbm [shape: f32[32,256], index: 14, kind: output, shape index: {0}]   ;;  %s3388_s15 = inlined_call_operand.vmem [shape: f32[32,384], index: 15, kind: output, shape index: {1}]  }
   0x1   :  { %3406 = sst [smem:[#allocation36_spill]] %s3375_s2 }
   0x2   :  { %3407 = sst [smem:[#allocation37_spill]] %s3377_s4 }
   0x3   :  { %3408 = sst [smem:[#allocation38_spill]] %s3387_s14 }
   0x4   :  { %21 = vsyncpa [#allocation3], 0 }
   0x5   :  { %22 = vsyncpa [#allocation6], 0 }
   0x6   :  { %23 = vsyncpa [#allocation9], 0 }
   0x7   :  { %24 = vsyncpa [#allocation12], 0 }
   0x8   :  { %25 = vsyncpa [#allocation15], 0 }
   0x9   :  { %26 = vsyncpa [#allocation18], 0 }
   0xa   :  { %27 = vsyncpa [#allocation4], 0 }
   0xb   :  { %29 = vsyncpa [#allocation4 + $0x1], 0  ;;  %s2925_s18 = smov 0   ;;  %s2927_s19 = smov 0  }
   0xc   :  { %s2929_s20 = smov 0   ;;  %s2931_s21 = smov 0  }
   0xd LB: > { %3409 = sst [smem:[#allocation28_spill]] %s2812_s18  ;;  %s2946_s22 = sadd.s32 4294967295, %s2824_s21   ;;  %s2824_s21 = sphi %s2931_s21, %s3448_s21   ;;  %s2820_s20 = sphi %s2929_s20, %s3451_s20   ;;  %s2816_s19 = sphi %s2927_s19, %s3450_s19   ;;  %s2812_s18 = sphi %s2925_s18, %s3449_s18  }
   0xe   : > { %3410 = sst [smem:[#allocation29_spill]] %s2816_s19  ;;  %s1820_s23 = sadd.s32 4294967294, %s2824_s21  }
   0xf   : > { %3411 = sst [smem:[#allocation30_spill]] %s2820_s20  ;;  %s2950_s24 = sadd.s32 1, %s2824_s21  }
  0x10   : > { %3412 = sst [smem:[#allocation31_spill]] %s2824_s21  ;;  %s346_s25 = sadd.s32 1, %s2820_s20 }
  0x11   : > { %3413 = sst [smem:[#allocation32_spill]] %s2950_s24  ;;  %s343_s26 = ssub.s32 %s2824_s21, %s2950_s24 }
  0x12   : > { %p356_p0 = scmp.ne.s32.totalorder %s2820_s20, %s2816_s19  ;;  %p344_p1 = scmp.eq.s32.totalorder %s343_s26, 0 }
  0x13   : > { %p357_p2 = scmp.eq.s32.totalorder %s2946_s22, 1  ;;  %p362_p3 = scmp.ne.s32.totalorder %s2816_s19, %s2812_s18 }
  0x14   : > { %p363_p4 = scmp.eq.s32.totalorder %s1820_s23, 1  ;;  %p1821_p7 = scmp.ge.s32.totalorder %s2824_s21, 1 }
  0x15   : > { %s2961_s27 = scalar_select %p344_p1, %s2820_s20, %s346_s25  }
  0x16   : > { %p2963_p5 = por %p357_p2, %p356_p0  ;;  %p2967_p6 = por %p363_p4, %p362_p3 }
  0x17   : > { %3414 = sst [smem:[#allocation33_spill]] %s2961_s27  ;;  %p396_p8 = scmp.lt.s32.totalorder %s2824_s21, 3 }
  0x18   : > { %s3415_s28 = scalar_select %p2963_p5, 1, 0 }
  0x19   : > { %s3417_s29 = scalar_select %p2967_p6, 1, 0 }
  0x1a   : > { %3416 = sst [smem:[#allocation34_spill]] %s3415_s28  ;;  %p3396_p9 = scmp.eq.s32.totalorder %s2946_s22, 0 }
  0x1b   : > { %3418 = sst [smem:[#allocation35_spill]] %s3417_s29  ;;  %p2974_p10 = pnand %p1821_p7, %p396_p8 }
  0x1c   : > { %s2826_s16 = smov [#allocation5]   ;;  %s2827_s23 = smov [#allocation8]  }
  0x1d   : > { %s3419_s30 = scalar_select %p2974_p10, 1, 0 }
  0x1e   : > { %s422_s17 = sshll.u32 %s2826_s16, 4  ;;  %p2299_p11 = pneg %p2974_p10  ;;  %s423_s17 = int_to_ptr.vmem [resolvable:$true] %s422_s17 }
  0x1f   : > { %s446_s25 = sshll.u32 %s2827_s23, 4  ;;  %s2828_s27 = smov [#allocation11]   ;;  %s2986_s25 = int_to_ptr.vmem [resolvable:$true] %s446_s25 }
  0x20   : > { %p2982_p12 = pnand %p3396_p9, %p2299_p11  ;;  %s2988_s20 = sshll.u32 %s2828_s27, 4  ;;  %s473_s20 = int_to_ptr.vmem [resolvable:$true] %s2988_s20 }
  0x21   : > { %s3421_s2 = sld [smem:[#allocation36_spill]] }
  0x22   : > { %p2998_p0 = pneg %p2982_p12 }
  0x27   : > { %s2430_s16 = scalar_lea.hbm %s3421_s2, 128 }
  0x28   : > { %p2431_p13 = scmp.ne.s32.totalorder %s3421_s2, %s2430_s16  ;;  %p2437_p3 = scmp.lt.u32.totalorder %s2430_s16, %s3421_s2 }
  0x2a   : > { %p2433_p1 = pnand %p2998_p0, %p2431_p13 }
  0x2c   : > { %p2434_p2 = pneg %p2433_p1 }
  0x2e   : > { %p2439_p4 = pnand %p2437_p3, %p2434_p2 }
  0x30   : > { %2442 = shalt.err (!%p2439_p4)
}
  0x31   : > { %s2443_s24 = scalar_lea.vmem %s423_s17, 128  ;;  %p2451_p9 = scmp.lt.s32.totalorder %s423_s17, %s423_s17 }
  0x32   : > { %p2444_p7 = scmp.ne.s32.totalorder %s423_s17, %s2443_s24  ;;  %p2452_p6 = scmp.lt.s32.totalorder %s2443_s24, %s2443_s24 }
  0x34   : > { %p2446_p8 = pnand %p2444_p7, %p2998_p0  ;;  %p2453_p5 = por %p2452_p6, %p2451_p9 }
  0x36   : > { %p2447_p11 = pneg %p2446_p8 }
  0x38   : > { %p2454_p10 = pnand %p2453_p5, %p2447_p11 }
  0x3a   : > { %2457 = shalt.err (!%p2454_p10)
}
  0x3b   : > { %2305 = dma.hbm_to_vmem [thread:$0]  (!%p2982_p12), %s3421_s2, 128, %s423_s17, [#allocation6]  }
  0x3c   : > { %s3423_s4 = sld [smem:[#allocation37_spill]] }
  0x42   : > { %s2458_s16 = scalar_lea.hbm %s3423_s4, 128 }
  0x43   : > { %p2459_p13 = scmp.ne.s32.totalorder %s3423_s4, %s2458_s16  ;;  %p2465_p5 = scmp.lt.u32.totalorder %s2458_s16, %s3423_s4 }
  0x45   : > { %p2461_p1 = pnand %p2459_p13, %p2998_p0 }
  0x47   : > { %p2462_p6 = pneg %p2461_p1 }
  0x49   : > { %p2467_p9 = pnand %p2465_p5, %p2462_p6 }
  0x4b   : > { %2470 = shalt.err (!%p2467_p9)
}
  0x4c   : > { %s2471_s17 = scalar_lea.vmem %s2986_s25, 128  ;;  %p2479_p4 = scmp.lt.s32.totalorder %s2986_s25, %s2986_s25 }
  0x4d   : > { %p2472_p10 = scmp.ne.s32.totalorder %s2986_s25, %s2471_s17  ;;  %p2480_p7 = scmp.lt.s32.totalorder %s2471_s17, %s2471_s17 }
  0x4f   : > { %p2474_p2 = pnand %p2472_p10, %p2998_p0  ;;  %p2481_p8 = por %p2480_p7, %p2479_p4 }
  0x51   : > { %p2475_p3 = pneg %p2474_p2 }
  0x53   : > { %p2482_p11 = pnand %p2481_p8, %p2475_p3 }
  0x55   : > { %2485 = shalt.err (!%p2482_p11)
}
  0x56   : > { %2311 = dma.hbm_to_vmem [thread:$0]  (!%p2982_p12), %s3423_s4, 128, %s2986_s25, [#allocation9]  }
  0x57   : > { %s2486_s14 = scalar_lea.hbm %s3381_s8, 2048 }
  0x58   : > { %p2487_p13 = scmp.ne.s32.totalorder %s3381_s8, %s2486_s14  ;;  %p2493_p5 = scmp.lt.u32.totalorder %s2486_s14, %s3381_s8 }
  0x5a   : > { %p2489_p1 = pnand %p2487_p13, %p2998_p0 }
  0x5c   : > { %p2490_p6 = pneg %p2489_p1 }
  0x5e   : > { %p2495_p9 = pnand %p2493_p5, %p2490_p6 }
  0x60   : > { %2498 = shalt.err (!%p2495_p9)
}
  0x61   : > { %s2499_s17 = scalar_lea.vmem %s473_s20, 2048  ;;  %p2507_p4 = scmp.lt.s32.totalorder %s473_s20, %s473_s20 }
  0x62   : > { %p2500_p10 = scmp.ne.s32.totalorder %s473_s20, %s2499_s17  ;;  %p2508_p7 = scmp.lt.s32.totalorder %s2499_s17, %s2499_s17 }
  0x64   : > { %p2502_p2 = pnand %p2500_p10, %p2998_p0  ;;  %p2509_p8 = por %p2508_p7, %p2507_p4 }
  0x66   : > { %p2503_p3 = pneg %p2502_p2 }
  0x68   : > { %p2510_p11 = pnand %p2509_p8, %p2503_p3 }
  0x6a   : > { %2513 = shalt.err (!%p2510_p11)
}
  0x6b   : > { %s3402_s25 = smov 128   ;;  %s2830_s19 = smov 8  }
  0x6c   : > { %2317 = dma.hbm_to_vmem [thread:$0]  (!%p2982_p12), %s3381_s8, 2048, %s473_s20, [#allocation12], %s3402_s25, %s3402_s25, %s2830_s19  }
  0x6d   : > { %s2831_s21 = smov [#allocation14]   ;;  %s2514_s27 = scalar_lea.hbm %s3383_s10, 2048 }
  0x6e   : > { %s496_s14 = sshll.u32 %s2831_s21, 4  ;;  %p2515_p13 = scmp.ne.s32.totalorder %s3383_s10, %s2514_s27  ;;  %s497_s14 = int_to_ptr.vmem [resolvable:$true] %s496_s14 }
  0x6f   : > { %p2521_p5 = scmp.lt.u32.totalorder %s2514_s27, %s3383_s10 }
  0x70   : > { %p2517_p1 = pnand %p2515_p13, %p2998_p0 }
  0x72   : > { %p2518_p6 = pneg %p2517_p1 }
  0x74   : > { %p2523_p9 = pnand %p2521_p5, %p2518_p6 }
  0x76   : > { %2526 = shalt.err (!%p2523_p9)
}
  0x77   : > { %s2527_s20 = scalar_lea.vmem %s497_s14, 2048  ;;  %p2535_p4 = scmp.lt.s32.totalorder %s497_s14, %s497_s14 }
  0x78   : > { %p2528_p10 = scmp.ne.s32.totalorder %s497_s14, %s2527_s20  ;;  %p2536_p7 = scmp.lt.s32.totalorder %s2527_s20, %s2527_s20 }
  0x7a   : > { %p2530_p2 = pnand %p2528_p10, %p2998_p0  ;;  %p2537_p8 = por %p2536_p7, %p2535_p4 }
  0x7c   : > { %p2531_p3 = pneg %p2530_p2 }
  0x7e   : > { %p2538_p11 = pnand %p2537_p8, %p2531_p3 }
  0x80   : > { %2541 = shalt.err (!%p2538_p11)
}
  0x81   : > { %2323 = dma.hbm_to_vmem [thread:$0]  (!%p2982_p12), %s3383_s10, 2048, %s497_s14, [#allocation15], %s3402_s25, %s3402_s25, %s2830_s19  }
  0x82   : > { %s2832_s28 = smov [#allocation17]   ;;  %s2833_s21 = smov [#allocation2]  }
  0x83   : > { %s520_s18 = sshll.u32 %s2832_s28, 4  ;;  %s408_s29 = sshll.u32 %s2833_s21, 4  ;;  %s521_s18 = int_to_ptr.vmem [resolvable:$true] %s520_s18  ;;  %s3080_s29 = int_to_ptr.vmem [resolvable:$true] %s408_s29 }
  0x84   : > { %s2542_s24 = scalar_lea.hbm %s3385_s12, 4096 }
  0x85   : > { %p2543_p13 = scmp.ne.s32.totalorder %s3385_s12, %s2542_s24  ;;  %p2549_p5 = scmp.lt.u32.totalorder %s2542_s24, %s3385_s12 }
  0x87   : > { %p2545_p1 = pnand %p2543_p13, %p2998_p0 }
  0x89   : > { %p2546_p6 = pneg %p2545_p1 }
  0x8b   : > { %p2551_p9 = pnand %p2549_p5, %p2546_p6 }
  0x8d   : > { %2554 = shalt.err (!%p2551_p9)
}
  0x8e   : > { %s2555_s4 = scalar_lea.vmem %s521_s18, 4096  ;;  %p2563_p4 = scmp.lt.s32.totalorder %s521_s18, %s521_s18 }
  0x8f   : > { %p2556_p10 = scmp.ne.s32.totalorder %s521_s18, %s2555_s4  ;;  %p2564_p7 = scmp.lt.s32.totalorder %s2555_s4, %s2555_s4 }
  0x91   : > { %p2558_p2 = pnand %p2556_p10, %p2998_p0  ;;  %p2565_p8 = por %p2564_p7, %p2563_p4 }
  0x93   : > { %p2559_p3 = pneg %p2558_p2 }
  0x95   : > { %p2566_p11 = pnand %p2565_p8, %p2559_p3 }
  0x97   : > { %2569 = shalt.err (!%p2566_p11)
}
  0x98   : > { %s3404_s28 = smov 256   ;;  %s3405_s21 = smov 16  }
  0x99   : > { %2329 = dma.hbm_to_vmem [thread:$0]  (!%p2982_p12), %s3385_s12, 4096, %s521_s18, [#allocation18], %s3404_s28, %s3404_s28, %s3405_s21  }
  0x9a   : > { %s2570_s20 = scalar_lea.hbm %s3374_s1, 4096 }
  0x9b   : > { %p2571_p13 = scmp.ne.s32.totalorder %s3374_s1, %s2570_s20  ;;  %p2577_p5 = scmp.lt.u32.totalorder %s2570_s20, %s3374_s1 }
  0x9d   : > { %p2573_p1 = pnand %p2571_p13, %p2998_p0 }
  0x9f   : > { %p2574_p6 = pneg %p2573_p1 }
  0xa1   : > { %p2579_p9 = pnand %p2577_p5, %p2574_p6 }
  0xa3   : > { %2582 = shalt.err (!%p2579_p9)
}
  0xa4   : > { %s2583_s18 = scalar_lea.vmem %s3080_s29, 4096  ;;  %p2591_p4 = scmp.lt.s32.totalorder %s3080_s29, %s3080_s29 }
  0xa5   : > { %p2584_p10 = scmp.ne.s32.totalorder %s3080_s29, %s2583_s18  ;;  %p2592_p7 = scmp.lt.s32.totalorder %s2583_s18, %s2583_s18 }
  0xa7   : > { %p2586_p2 = pnand %p2584_p10, %p2998_p0  ;;  %p2593_p8 = por %p2592_p7, %p2591_p4 }
  0xa9   : > { %p2587_p3 = pneg %p2586_p2 }
  0xab   : > { %p2594_p11 = pnand %p2593_p8, %p2587_p3 }
  0xad   : > { %2597 = shalt.err (!%p2594_p11)
}
  0xae   : > { %s3424_s25 = smov 128   ;;  %s2836_s24 = smov [#allocation7]  }
  0xaf   : > { %2302 = dma.hbm_to_vmem [thread:$0]  (!%p2982_p12), %s3374_s1, 4096, %s3080_s29, [#allocation3], %s3424_s25, %s3424_s25, %s2830_s19  }
  0xb0   : > { %s432_s17 = sshll.u32 %s2836_s24, 4  ;;  %s2837_s20 = smov [#allocation10]   ;;  %s433_s17 = int_to_ptr.vmem [resolvable:$true] %s432_s17 }
  0xb1   : > { %s456_s2 = sshll.u32 %s2837_s20, 4  ;;  %s2598_s18 = scalar_lea.hbm %s3376_s3, 2048  ;;  %s3129_s2 = int_to_ptr.vmem [resolvable:$true] %s456_s2 }
  0xb2   : > { %p2599_p13 = scmp.ne.s32.totalorder %s3376_s3, %s2598_s18  ;;  %p2605_p5 = scmp.lt.u32.totalorder %s2598_s18, %s3376_s3 }
  0xb4   : > { %p2601_p1 = pnand %p2599_p13, %p2998_p0 }
  0xb6   : > { %p2602_p6 = pneg %p2601_p1 }
  0xb8   : > { %p2607_p9 = pnand %p2605_p5, %p2602_p6 }
  0xba   : > { %2610 = shalt.err (!%p2607_p9)
}
  0xbb   : > { %s2611_s27 = scalar_lea.vmem %s433_s17, 2048  ;;  %p2619_p4 = scmp.lt.s32.totalorder %s433_s17, %s433_s17 }
  0xbc   : > { %p2612_p10 = scmp.ne.s32.totalorder %s433_s17, %s2611_s27  ;;  %p2620_p7 = scmp.lt.s32.totalorder %s2611_s27, %s2611_s27 }
  0xbe   : > { %p2614_p2 = pnand %p2612_p10, %p2998_p0  ;;  %p2621_p8 = por %p2620_p7, %p2619_p4 }
  0xc0   : > { %p2615_p3 = pneg %p2614_p2 }
  0xc2   : > { %p2622_p11 = pnand %p2621_p8, %p2615_p3 }
  0xc4   : > { %2625 = shalt.err (!%p2622_p11)
}
  0xc5   : > { %2308 = dma.hbm_to_vmem [thread:$0]  (!%p2982_p12), %s3376_s3, 2048, %s433_s17, [#allocation6], %s3424_s25, %s3424_s25, %s2830_s19  }
  0xc6   : > { %s2626_s14 = scalar_lea.hbm %s3378_s5, 4096 }
  0xc7   : > { %p2627_p13 = scmp.ne.s32.totalorder %s3378_s5, %s2626_s14  ;;  %p2633_p5 = scmp.lt.u32.totalorder %s2626_s14, %s3378_s5 }
  0xc9   : > { %p2629_p1 = pnand %p2627_p13, %p2998_p0 }
  0xcb   : > { %p2630_p6 = pneg %p2629_p1 }
  0xcd   : > { %p2635_p9 = pnand %p2633_p5, %p2630_p6 }
  0xcf   : > { %2638 = shalt.err (!%p2635_p9)
}
  0xd0   : > { %s2639_s19 = scalar_lea.vmem %s3129_s2, 4096  ;;  %p2647_p4 = scmp.lt.s32.totalorder %s3129_s2, %s3129_s2 }
  0xd1   : > { %p2640_p10 = scmp.ne.s32.totalorder %s3129_s2, %s2639_s19  ;;  %p2648_p7 = scmp.lt.s32.totalorder %s2639_s19, %s2639_s19 }
  0xd3   : > { %p2642_p2 = pnand %p2640_p10, %p2998_p0  ;;  %p2649_p8 = por %p2648_p7, %p2647_p4 }
  0xd5   : > { %p2643_p3 = pneg %p2642_p2 }
  0xd7   : > { %p2650_p11 = pnand %p2649_p8, %p2643_p3 }
  0xd9   : > { %2653 = shalt.err (!%p2650_p11)
}
  0xda   : > { %s3425_s25 = smov 16   ;;  %s3426_s17 = smov 256  }
  0xdb   : > { %2314 = dma.hbm_to_vmem [thread:$0]  (!%p2982_p12), %s3378_s5, 4096, %s3129_s2, [#allocation9], %s3426_s17, %s3426_s17, %s3425_s25  }
  0xdc   : > { %s2838_s21 = smov [#allocation13]   ;;  %s2839_s20 = smov [#allocation16]  }
  0xdd   : > { %s486_s24 = sshll.u32 %s2838_s21, 4  ;;  %s510_s14 = sshll.u32 %s2839_s20, 4  ;;  %s487_s24 = int_to_ptr.vmem [resolvable:$true] %s486_s24  ;;  %s3178_s14 = int_to_ptr.vmem [resolvable:$true] %s510_s14 }
  0xde   : > { %s2654_s16 = scalar_lea.hbm %s3382_s9, 128 }
  0xdf   : > { %p2655_p13 = scmp.ne.s32.totalorder %s3382_s9, %s2654_s16  ;;  %p2661_p5 = scmp.lt.u32.totalorder %s2654_s16, %s3382_s9 }
  0xe1   : > { %p2657_p1 = pnand %p2655_p13, %p2998_p0 }
  0xe3   : > { %p2658_p6 = pneg %p2657_p1 }
  0xe5   : > { %p2663_p9 = pnand %p2661_p5, %p2658_p6 }
  0xe7   : > { %2666 = shalt.err (!%p2663_p9)
}
  0xe8   : > { %s2667_s25 = scalar_lea.vmem %s487_s24, 128  ;;  %p2675_p4 = scmp.lt.s32.totalorder %s487_s24, %s487_s24 }
  0xe9   : > { %p2668_p10 = scmp.ne.s32.totalorder %s487_s24, %s2667_s25  ;;  %p2676_p7 = scmp.lt.s32.totalorder %s2667_s25, %s2667_s25 }
  0xeb   : > { %p2670_p2 = pnand %p2668_p10, %p2998_p0  ;;  %p2677_p8 = por %p2676_p7, %p2675_p4 }
  0xed   : > { %p2671_p3 = pneg %p2670_p2 }
  0xef   : > { %p2678_p11 = pnand %p2677_p8, %p2671_p3 }
  0xf1   : > { %2681 = shalt.err (!%p2678_p11)
}
  0xf2   : > { %2320 = dma.hbm_to_vmem [thread:$0]  (!%p2982_p12), %s3382_s9, 128, %s487_s24, [#allocation12]  }
  0xf3   : > { %s2682_s4 = scalar_lea.hbm %s3384_s11, 128 }
  0xf4   : > { %p2683_p13 = scmp.ne.s32.totalorder %s3384_s11, %s2682_s4  ;;  %p2689_p5 = scmp.lt.u32.totalorder %s2682_s4, %s3384_s11 }
  0xf6   : > { %p2685_p1 = pnand %p2683_p13, %p2998_p0 }
  0xf8   : > { %p2686_p6 = pneg %p2685_p1 }
  0xfa   : > { %p2691_p9 = pnand %p2689_p5, %p2686_p6 }
  0xfc   : > { %2694 = shalt.err (!%p2691_p9)
}
  0xfd   : > { %s2695_s24 = scalar_lea.vmem %s3178_s14, 128  ;;  %p2703_p4 = scmp.lt.s32.totalorder %s3178_s14, %s3178_s14 }
  0xfe   : > { %p2696_p10 = scmp.ne.s32.totalorder %s3178_s14, %s2695_s24  ;;  %p2704_p7 = scmp.lt.s32.totalorder %s2695_s24, %s2695_s24 }
 0x100   : > { %p2698_p2 = pnand %p2696_p10, %p2998_p0  ;;  %p2705_p8 = por %p2704_p7, %p2703_p4 }
 0x102   : > { %p2699_p3 = pneg %p2698_p2 }
 0x104   : > { %p2706_p11 = pnand %p2705_p8, %p2699_p3 }
 0x106   : > { %2709 = shalt.err (!%p2706_p11)
}
 0x107   : > { %2326 = dma.hbm_to_vmem [thread:$0]  (!%p2982_p12), %s3384_s11, 128, %s3178_s14, [#allocation15]  }
 0x108   : > { %s2840_s25 = smov [#allocation19]   ;;  %s2710_s20 = scalar_lea.hbm %s3386_s13, 256 }
 0x109   : > { %s534_s17 = sshll.u32 %s2840_s25, 4  ;;  %p2711_p13 = scmp.ne.s32.totalorder %s3386_s13, %s2710_s20  ;;  %s535_s17 = int_to_ptr.vmem [resolvable:$true] %s534_s17 }
 0x10a   : > { %p2717_p5 = scmp.lt.u32.totalorder %s2710_s20, %s3386_s13 }
 0x10b   : > { %p2713_p1 = pnand %p2711_p13, %p2998_p0 }
 0x10d   : > { %p2714_p6 = pneg %p2713_p1 }
 0x10f   : > { %p2719_p9 = pnand %p2717_p5, %p2714_p6 }
 0x111   : > { %2722 = shalt.err (!%p2719_p9)
}
 0x112   : > { %s2723_s14 = scalar_lea.vmem %s535_s17, 256  ;;  %p2731_p4 = scmp.lt.s32.totalorder %s535_s17, %s535_s17 }
 0x113   : > { %p2724_p10 = scmp.ne.s32.totalorder %s535_s17, %s2723_s14  ;;  %p2732_p7 = scmp.lt.s32.totalorder %s2723_s14, %s2723_s14 }
 0x115   : > { %p2726_p2 = pnand %p2724_p10, %p2998_p0  ;;  %p2733_p8 = por %p2732_p7, %p2731_p4 }
 0x117   : > { %p2727_p3 = pneg %p2726_p2 }
 0x119   : > { %p2734_p11 = pnand %p2733_p8, %p2727_p3 }
 0x11b   : > { %2737 = shalt.err (!%p2734_p11)
}
 0x11c   : > { %2332 = dma.hbm_to_vmem [thread:$0]  (!%p2982_p12), %s3386_s13, 256, %s535_s17, [#allocation18]  }
 0x11d   : > { %p3427_p13 = scmp.ne.s32.totalorder %s3419_s30, 0 }
 0x11e   : > { %p3428_p1 = scmp.eq.s32.totalorder (!%p3427_p13), %s2946_s22, 0 }
 0x11f   : > { %566 = sbr.rel (%p3427_p13) target bundleno = 1849 (0x739), region = 76 }
 0x126   : > { %2783 = dma.done.wait (%p3428_p1), [#allocation3], 4096   ;;  %p3429_p0 = pmov %p3428_p1 }
 0x128   : > { %2785 = vsyncadd (%p3429_p0), [#allocation3], 4294963200  ;;  %p3430_p6 = pmov %p3429_p0 }
 0x129   : > { %p3431_p5 = pmov %p3429_p0 }
 0x12a   : > { %2787 = dma.done.wait (%p3430_p6), [#allocation6], 2176  }
 0x12b   : > { %2789 = vsyncadd (%p3431_p5), [#allocation6], 4294965120  ;;  %p3432_p9 = pmov %p3429_p0 }
 0x12c   : > { %p3433_p12 = pmov %p3429_p0 }
 0x12d   : > { %2791 = dma.done.wait (%p3432_p9), [#allocation9], 4224  }
 0x12e   : > { %2793 = vsyncadd (%p3433_p12), [#allocation9], 4294963072  ;;  %p3434_p10 = pmov %p3429_p0 }
 0x12f   : > { %p3435_p2 = pmov %p3429_p0 }
 0x130   : > { %2795 = dma.done.wait (%p3434_p10), [#allocation12], 2176  }
 0x131   : > { %2797 = vsyncadd (%p3435_p2), [#allocation12], 4294965120  ;;  %p3436_p3 = pmov %p3429_p0 }
 0x132   : > { %p3437_p4 = pmov %p3429_p0 }
 0x133   : > { %2799 = dma.done.wait (%p3436_p3), [#allocation15], 2176  }
 0x134   : > { %2801 = vsyncadd (%p3437_p4), [#allocation15], 4294965120  ;;  %p3438_p7 = pmov %p3429_p0 }
 0x135   : > { %p3439_p8 = pmov %p3429_p0 }
 0x136   : > { %2803 = dma.done.wait (%p3438_p7), [#allocation18], 4352  }
 0x137   : > { %2805 = vsyncadd (%p3439_p8), [#allocation18], 4294962944  ;;  %s1847_s30 = sshll.u32 %s2946_s22, 1  ;;  %v708_v0 = vld [vmem:[#allocation2 + $0x80] sm:$0xff]  ;;  %v709_v1 = vld [vmem:[#allocation2 + $0x88] sm:$0xff]  ;;  %s3440_s19 = sld [smem:[#allocation29_spill]] }
 0x138   : > { %p667_p11 = scmp.lt.s32.totalorder %s1847_s30, 3  ;;  %v692_v2 = vld [vmem:[#allocation2] sm:$0xff]  ;;  %v2060_v3 = vpack.c.bf16 %v709_v1, %v708_v0  ;;  %v693_v4 = vld [vmem:[#allocation2 + $0x8] sm:$0xff]  ;;  %v710_v5 = vld [vmem:[#allocation2 + $0x90] sm:$0xff]  ;;  %s3441_s27 = sld [smem:[#allocation34_spill]] }
 0x139   : > { %v711_v6 = vld [vmem:[#allocation2 + $0x98] sm:$0xff]  ;;  %v2062_v7 = vpack.c.bf16 %v693_v4, %v692_v2  ;;  %v694_v9 = vld [vmem:[#allocation2 + $0x10] sm:$0xff]  ;;  %v712_v11 = vld [vmem:[#allocation2 + $0xa0] sm:$0xff] }
 0x13a   : > { %s3453_s30 = smov (!%p667_p11, %s1847_s30), 3  ;;  %v2064_v8 = vpack.c.bf16 %v711_v6, %v710_v5  ;;  %v695_v10 = vld [vmem:[#allocation2 + $0x18] sm:$0xff]  ;;  %2061 = vmatprep.subr.bf16.mxu0 %v2060_v3  ;;  %v713_v12 = vld [vmem:[#allocation2 + $0xa8] sm:$0xff]  ;;  %v696_v15 = vld [vmem:[#allocation2 + $0x20] sm:$0xff] }
 0x13b   : > { %2063 = vmatpush3.bf16.msra.mxu0 %v2062_v7  ;;  %v2066_v13 = vpack.c.bf16 %v695_v10, %v694_v9  ;;  %s1860_s26 = sshll.u32 %s3453_s30, 4  ;;  %v2068_v14 = vpack.c.bf16 %v713_v12, %v712_v11  ;;  %v697_v16 = vld [vmem:[#allocation2 + $0x28] sm:$0xff]  ;;  %v714_v17 = vld [vmem:[#allocation2 + $0xb0] sm:$0xff]  ;;  %v715_v18 = vld [vmem:[#allocation2 + $0xb8] sm:$0xff]  ;;  %v724_v12 = vlaneseq  ;;  %s2252_s28 = smul.u32 24, %s3453_s30 }
 0x13c   : > { %2065 = vmatprep.subr.bf16.mxu0 %v2064_v8  ;;  %s3272_s2 = scalar_lea.vmem %s3373_s0, %s1860_s26  ;;  %v2070_v19 = vpack.c.bf16 %v697_v16, %v696_v15  ;;  %v2072_v20 = vpack.c.bf16 %v715_v18, %v714_v17  ;;  %v698_v21 = vld [vmem:[#allocation2 + $0x30] sm:$0xff]  ;;  %v699_v22 = vld [vmem:[#allocation2 + $0x38] sm:$0xff]  ;;  %v716_v23 = vld [vmem:[#allocation2 + $0xc0] sm:$0xff]  ;;  %s1851_s18 = sshll.u32 %s3453_s30, 3 }
 0x13d   : > { %v717_v24 = vld [vmem:[#allocation2 + $0xc8] sm:$0xff]  ;;  %v2074_v26 = vpack.c.bf16 %v699_v22, %v698_v21  ;;  %v700_v28 = vld [vmem:[#allocation2 + $0x40] sm:$0xff]  ;;  %v718_v30 = vld [vmem:[#allocation2 + $0xd0] sm:$0xff]  ;;  %s3301_s4 = scalar_lea.vmem %s3388_s15, %s2252_s28  ;;  %s677_s14 = scalar_lea.vmem %s3380_s7, %s1851_s18 }
 0x13e   : > { %v688_v25 = vld [vmem:[%s3272_s2 + $0x8] sm:$0xff]  ;;  %v2076_v27 = vpack.c.bf16 %v717_v24, %v716_v23  ;;  %v719_v31 = vld [vmem:[#allocation2 + $0xd8] sm:$0xff]  ;;  %v702_v34 = vld [vmem:[#allocation2 + $0x50] sm:$0xff]  ;;  %s655_s24 = sand.u32 1, %s3440_s19   ;;  %s3442_s28 = sld [smem:[#allocation38_spill]] }
 0x13f   : > { %2067 = vmatpush3.bf16.msra.mxu0 %v2066_v13  ;;  %792 = vmatprep.mubr.f32.mxu0 %v688_v25  ;;  %v701_v29 = vld [vmem:[#allocation2 + $0x48] sm:$0xff]  ;;  %v2080_v33 = vpack.c.bf16 %v719_v31, %v718_v30  ;;  %v703_v35 = vld [vmem:[#allocation2 + $0x58] sm:$0xff]  ;;  %v720_v36 = vld [vmem:[#allocation2 + $0xe0] sm:$0xff]  ;;  %v725_v13 = vshrl.u32 %v724_v12, 7  ;;  %s1846_s30 = sshll.u32 %s655_s24, 5  ;;  %s3332_s20 = scalar_lea.sflag [#allocation4], %s655_s24 }
 0x140   : > { %2069 = vmatprep.subr.bf16.mxu0 %v2068_v14  ;;  %v2078_v32 = vpack.c.bf16 %v701_v29, %v700_v28  ;;  %v721_v37 = vld [vmem:[#allocation2 + $0xe8] sm:$0xff]  ;;  %v2082_v38 = vpack.c.bf16 %v703_v35, %v702_v34  ;;  %v704_v40 = vld [vmem:[#allocation2 + $0x60] sm:$0xff]  ;;  %v722_v42 = vld [vmem:[#allocation2 + $0xf0] sm:$0xff]  ;;  %s657_s26 = scalar_lea.vmem [#allocation20], %s1846_s30  ;;  %p3443_p1 = scmp.ne.s32.totalorder %s3441_s27, 0 }
 0x141   : > { %v2084_v39 = vpack.c.bf16 %v721_v37, %v720_v36  ;;  %v705_v41 = vld [vmem:[#allocation2 + $0x68] sm:$0xff]  ;;  %v723_v43 = vld [vmem:[#allocation2 + $0xf8] sm:$0xff]  ;;  %v706_v46 = vld [vmem:[#allocation2 + $0x70] sm:$0xff]  ;;  %v3278_v14 = vsub.s32 0, %v725_v13  ;;  %s1609_s23 = sshll.u32 %s657_s26, 4  ;;  %s3325_s23 = int_to_ptr.vmem [resolvable:$true] %s1609_s23 }
 0x142   : > { %v2086_v44 = vpack.c.bf16 %v705_v41, %v704_v40  ;;  %v2088_v45 = vpack.c.bf16 %v723_v43, %v722_v42  ;;  %v707_v47 = vld [vmem:[#allocation2 + $0x78] sm:$0xff]  ;;  %v687_v49 = vld [vmem:[%s3272_s2] sm:$0xff]  ;;  %v689_v51 = vld [vmem:[%s3272_s2 + $0x10] sm:$0xff] }
 0x143   : > { %2071 = vmatpush3.bf16.msra.mxu0 %v2070_v19  ;;  %v2090_v48 = vpack.c.bf16 %v707_v47, %v706_v46  ;;  %v690_v50 = vld [vmem:[%s3272_s2 + $0x18] sm:$0xff]  ;;  %v863_v52 = vld [vmem:[#allocation7] sm:$0xff]  ;;  %v864_v53 = vld [vmem:[#allocation7 + $0x8] sm:$0xff]  ;;  %s1862_s2 = sshll.u32 %s2946_s22, 9  ;;  %s2738_s22 = scalar_lea.vmem %s3325_s23, 512 }
 0x144   : > { %2073 = vmatprep.subr.bf16.mxu0 %v2072_v20  ;;  %v2092_v54 = vpack.c.bf16 %v864_v53, %v863_v52  ;;  %v865_v55 = vld [vmem:[#allocation7 + $0x10] sm:$0xff]  ;;  %v866_v56 = vld [vmem:[#allocation7 + $0x18] sm:$0xff]  ;;  %v867_v58 = vld [vmem:[#allocation7 + $0x20] sm:$0xff]  ;;  %s3330_s21 = scalar_lea.hbm %s3442_s28, %s1862_s2  ;;  %p2739_p13 = scmp.ne.s32.totalorder %s3325_s23, %s2738_s22 }
 0x145   : > { %v2096_v57 = vpack.c.bf16 %v866_v56, %v865_v55  ;;  %v868_v59 = vld [vmem:[#allocation7 + $0x28] sm:$0xff]  ;;  %v869_v60 = vld [vmem:[#allocation7 + $0x30] sm:$0xff]  ;;  %v870_v62 = vld [vmem:[#allocation7 + $0x38] sm:$0xff] }
 0x146   : > { %2093 = vmatprep.subr.bf16.mxu1 %v2092_v54  ;;  %v2100_v61 = vpack.c.bf16 %v868_v59, %v867_v58  ;;  %v2104_v63 = vpack.c.bf16 %v870_v62, %v869_v60  ;;  %v871_v0 = vld [vmem:[#allocation7 + $0x40] sm:$0xff]  ;;  %v872_v1 = vld [vmem:[#allocation7 + $0x48] sm:$0xff]  ;;  %v873_v3 = vld [vmem:[#allocation7 + $0x50] sm:$0xff]  ;;  %p2740_p0 = pnand %p2739_p13, %p3443_p1 }
 0x147   : > { %2075 = vmatpush3.bf16.msra.mxu0 %v2074_v26  ;;  %2095 = vmatpush3.bf16.msra.mxu1 %v2092_v54  ;;  %v2108_v2 = vpack.c.bf16 %v872_v1, %v871_v0  ;;  %v874_v4 = vld [vmem:[#allocation7 + $0x58] sm:$0xff]  ;;  %v875_v6 = vld [vmem:[#allocation7 + $0x60] sm:$0xff]  ;;  %v876_v7 = vld [vmem:[#allocation7 + $0x68] sm:$0xff]  ;;  %v3283_v0 = vsub.s32 2, %v725_v13 }
 0x148   : > { %2077 = vmatprep.subr.bf16.mxu0 %v2076_v27  ;;  %2097 = vmatprep.subr.bf16.mxu1 %v2096_v57  ;;  %v2112_v5 = vpack.c.bf16 %v874_v4, %v873_v3  ;;  %v2116_v8 = vpack.c.bf16 %v876_v7, %v875_v6  ;;  %v877_v9 = vld [vmem:[#allocation7 + $0x70] sm:$0xff]  ;;  %v878_v10 = vld [vmem:[#allocation7 + $0x78] sm:$0xff]  ;;  %p2741_p6 = pneg %p2740_p0 }
 0x149   : > { %v2120_v11 = vpack.c.bf16 %v878_v10, %v877_v9  ;;  %v691_v15 = vld [vmem:[#allocation5] sm:$0xff] }
 0x14a   : > { %v727_v17 = vrot.slane %v691_v15, %v3278_v14 }
 0x14b   : > { %2079 = vmatpush3.bf16.msra.mxu0 %v2078_v32  ;;  %2099 = vmatpush3.bf16.msra.mxu1 %v2096_v57 }
 0x14c   : > { %2081 = vmatprep.subr.bf16.mxu0 %v2080_v33  ;;  %2101 = vmatprep.subr.bf16.mxu1 %v2100_v61 }
 0x14f   : > { %2083 = vmatpush3.bf16.msra.mxu0 %v2082_v38  ;;  %2103 = vmatpush3.bf16.msra.mxu1 %v2100_v61 }
 0x150   : > { %2085 = vmatprep.subr.bf16.mxu0 %v2084_v39  ;;  %2105 = vmatprep.subr.bf16.mxu1 %v2104_v63 }
 0x153   : > { %2087 = vmatpush3.bf16.msra.mxu0 %v2086_v44  ;;  %2107 = vmatpush3.bf16.msra.mxu1 %v2104_v63  ;;  %v3281_v63 = vsub.s32 1, %v725_v13  ;;  %v1018_v13 = vld [vmem:[#allocation10 + $0x8] sm:$0xff] }
 0x154   : > { %2089 = vmatprep.subr.bf16.mxu0 %v2088_v45  ;;  %2109 = vmatprep.subr.bf16.mxu1 %v2108_v2 }
 0x157   : > { %2091 = vmatpush3.bf16.msra.mxu0 %v2090_v48  ;;  %2111 = vmatpush3.bf16.msra.mxu1 %v2108_v2  ;;  %v851_v2 = vrot.slane %v691_v15, %v3281_v63 }
 0x158   : > { %2113 = vmatprep.subr.bf16.mxu1 %v2112_v5 }
 0x15a   : > { %793 = vmatmul.mubr.f32.vlgmr.msra.gmra.mrb[0].mxu0 %v687_v49 }
 0x15b   : > { %797 = vmatprep.mubr.f32.mxu0 %v690_v50  ;;  %2115 = vmatpush3.bf16.msra.mxu1 %v2112_v5  ;;  %v857_v5 = vrot.slane %v691_v15, %v3283_v0  ;;  %v1022_v15 = vld [vmem:[#allocation10 + $0x28] sm:$0xff] }
 0x15c   : > { %2117 = vmatprep.subr.bf16.mxu1 %v2116_v8 }
 0x15e   : > { %798 = vmatmul.mubr.f32.gmra.mrb[2].mxu0 %v689_v51 }
 0x15f   : > { %2119 = vmatpush3.bf16.msra.mxu1 %v2116_v8 }
 0x160   : > { %2121 = vmatprep.subr.bf16.mxu1 %v2120_v11 }
 0x163   : > { %2123 = vmatpush3.bf16.msra.mxu1 %v2120_v11 }
 0x22d   : > { %v1895_v16 = vpop.f32.mrb[0].mxu0 }
 0x22e   : > { %v1896_v18 = vpop.f32.mrb[1].mxu0 }
 0x22f   : > { %v1897_v19 = vadd.f32 %v1896_v18, %v1895_v16  ;;  %v1020_v18 = vld [vmem:[#allocation10 + $0x18] sm:$0xff] }
 0x231   : > { %v795_v20 = vadd.f32 %v1897_v19, %v727_v17  ;;  %v1898_v21 = vpop.f32.mrb[2].mxu0  ;;  %v2124_v19 = vpack.c.bf16 %v1020_v18, %v1018_v13 }
 0x232   : > { %v1899_v22 = vpop.f32.mrb[3].mxu0 }
 0x233   : > { %v803_v23 = vrot.slane %v795_v20, 4  ;;  %v818_v24 = vmul.f32 %v795_v20, %v795_v20  ;;  %v1900_v25 = vadd.f32 %v1899_v22, %v1898_v21  ;;  %v1019_v21 = vld [vmem:[#allocation10 + $0x10] sm:$0xff]  ;;  %2125 = vmatprep.subr.bf16.mxu0 %v2124_v19 }
 0x235   : > { %v804_v26 = vadd.f32 %v803_v23, %v795_v20  ;;  %v820_v27 = vrot.slane %v818_v24, 4  ;;  %v800_v28 = vadd.f32 %v1900_v25, %v727_v17  ;;  %v1024_v23 = vld [vmem:[#allocation10 + $0x38] sm:$0xff]  ;;  %v1021_v25 = vld [vmem:[#allocation10 + $0x20] sm:$0xff] }
 0x237   : > { %v805_v29 = vrot.slane %v804_v26, 2  ;;  %v821_v30 = vadd.f32 %v820_v27, %v818_v24  ;;  %v809_v31 = vrot.slane %v800_v28, 4  ;;  %v819_v32 = vmul.f32 %v800_v28, %v800_v28 }
 0x238   : > { %v2128_v24 = vpack.c.bf16 %v1024_v23, %v1022_v15 }
 0x239   : > { %v822_v33 = vrot.slane %v821_v30, 2  ;;  %v810_v34 = vadd.f32 %v809_v31, %v800_v28  ;;  %v826_v35 = vrot.slane %v819_v32, 4  ;;  %v806_v36 = vadd.f32 %v805_v29, %v804_v26  ;;  %v1023_v26 = vld [vmem:[#allocation10 + $0x30] sm:$0xff]  ;;  %v1028_v29 = vld [vmem:[#allocation10 + $0x58] sm:$0xff]  ;;  %v1025_v31 = vld [vmem:[#allocation10 + $0x40] sm:$0xff] }
 0x23a   : > { %v2130_v27 = vpack.c.bf16 %v1023_v26, %v1021_v25 }
 0x23b   : > { %v823_v37 = vadd.f32 %v822_v33, %v821_v30  ;;  %v811_v38 = vrot.slane %v810_v34, 2  ;;  %v827_v39 = vadd.f32 %v826_v35, %v819_v32  ;;  %v807_v40 = vrot.slane %v806_v36, 1  ;;  %v1027_v32 = vld [vmem:[#allocation10 + $0x50] sm:$0xff]  ;;  %v1032_v35 = vld [vmem:[#allocation10 + $0x78] sm:$0xff] }
 0x23c   : > { %v2134_v33 = vpack.c.bf16 %v1027_v32, %v1025_v31 }
 0x23d   : > { %v824_v41 = vrot.slane %v823_v37, 1  ;;  %v812_v42 = vadd.f32 %v811_v38, %v810_v34  ;;  %v828_v43 = vrot.slane %v827_v39, 2  ;;  %v808_v44 = vadd.f32 %v807_v40, %v806_v36  ;;  %v1030_v34 = vld [vmem:[#allocation10 + $0x68] sm:$0xff]  ;;  %v1031_v38 = vld [vmem:[#allocation10 + $0x70] sm:$0xff] }
 0x23e   : > { %v2136_v36 = vpack.c.bf16 %v1032_v35, %v1030_v34  ;;  %v1034_v40 = vld [vmem:[#allocation10 + $0x88] sm:$0xff] }
 0x23f   : > { %v813_v45 = vrot.slane %v812_v42, 1  ;;  %v829_v46 = vadd.f32 %v828_v43, %v827_v39  ;;  %v816_v47 = vmul.f32 0.125, %v808_v44  ;;  %v825_v48 = vadd.f32 %v824_v41, %v823_v37  ;;  %v1029_v37 = vld [vmem:[#allocation10 + $0x60] sm:$0xff]  ;;  %v1036_v41 = vld [vmem:[#allocation10 + $0x98] sm:$0xff]  ;;  %v1035_v44 = vld [vmem:[#allocation10 + $0x90] sm:$0xff] }
 0x240   : > { %v2138_v39 = vpack.c.bf16 %v1031_v38, %v1029_v37  ;;  %v1033_v43 = vld [vmem:[#allocation10 + $0x80] sm:$0xff] }
 0x241   : > { %v830_v49 = vrot.slane %v829_v46, 1  ;;  %v832_v50 = vmul.f32 0.125, %v825_v48  ;;  %v834_v51 = vmul.f32 %v816_v47, %v816_v47  ;;  %v814_v52 = vadd.f32 %v813_v45, %v812_v42 }
 0x242   : > { %v840_v1 = vsub.f32 %v795_v20, %v816_v47  ;;  %v1017_v20 = vld [vmem:[#allocation10] sm:$0xff]  ;;  %v2140_v42 = vpack.c.bf16 %v1036_v41, %v1034_v40  ;;  %v2142_v45 = vpack.c.bf16 %v1035_v44, %v1033_v43  ;;  %v1040_v47 = vld [vmem:[#allocation10 + $0xb8] sm:$0xff] }
 0x243   : > { %v831_v53 = vadd.f32 %v830_v49, %v829_v46  ;;  %v836_v54 = vsub.f32 %v832_v50, %v834_v51  ;;  %v817_v55 = vmul.f32 0.125, %v814_v52  ;;  %v2126_v22 = vpack.c.bf16 %v1019_v21, %v1017_v20  ;;  %v1038_v46 = vld [vmem:[#allocation10 + $0xa8] sm:$0xff]  ;;  %v1037_v49 = vld [vmem:[#allocation10 + $0xa0] sm:$0xff]  ;;  %v1039_v50 = vld [vmem:[#allocation10 + $0xb0] sm:$0xff] }
 0x244   : > { %v2144_v48 = vpack.c.bf16 %v1040_v47, %v1038_v46  ;;  %v2146_v51 = vpack.c.bf16 %v1039_v50, %v1037_v49  ;;  %v1042_v52 = vld [vmem:[#allocation10 + $0xc8] sm:$0xff] }
 0x245   : > { %v833_v56 = vmul.f32 0.125, %v831_v53  ;;  %v838_v57 = vmax.f32 %v836_v54, 0.0  ;;  %v835_v58 = vmul.f32 %v817_v55, %v817_v55  ;;  %v841_v7 = vsub.f32 %v800_v28, %v817_v55  ;;  %2127 = vmatpush1.bf16.msra.mxu0 %v2126_v22  ;;  %v1026_v28 = vld [vmem:[#allocation10 + $0x48] sm:$0xff]  ;;  %v1044_v53 = vld [vmem:[#allocation10 + $0xd8] sm:$0xff]  ;;  %v1041_v55 = vld [vmem:[#allocation10 + $0xc0] sm:$0xff] }
 0x246   : > { %2129 = vmatprep.subr.bf16.mxu0 %v2128_v24  ;;  %v2132_v30 = vpack.c.bf16 %v1028_v29, %v1026_v28  ;;  %v2148_v54 = vpack.c.bf16 %v1044_v53, %v1042_v52 }
 0x247   : > { %v842_v59 = vadd.f32 1e-05, %v838_v57  ;;  %v837_v60 = vsub.f32 %v833_v56, %v835_v58  ;;  %v1043_v56 = vld [vmem:[#allocation10 + $0xd0] sm:$0xff]  ;;  %v1046_v58 = vld [vmem:[#allocation10 + $0xe8] sm:$0xff] }
 0x248   : > { %v2150_v57 = vpack.c.bf16 %v1043_v56, %v1041_v55 }
 0x249   : > { %2410 = vrsqrt.f32 %v842_v59  ;;  %v839_v61 = vmax.f32 %v837_v60, 0.0  ;;  %2131 = vmatpush1.bf16.msra.mxu0 %v2130_v27  ;;  %v1048_v59 = vld [vmem:[#allocation10 + $0xf8] sm:$0xff] }
 0x24a   : > { %2133 = vmatprep.subr.bf16.mxu0 %v2132_v30  ;;  %v2152_v60 = vpack.c.bf16 %v1048_v59, %v1046_v58 }
 0x24b   : > { %v843_v62 = vadd.f32 1e-05, %v839_v61  ;;  %v1045_v61 = vld [vmem:[#allocation10 + $0xe0] sm:$0xff] }
 0x24d   : > { %2412 = vrsqrt.f32 %v843_v62  ;;  %2135 = vmatpush1.bf16.msra.mxu0 %v2134_v33  ;;  %v1047_v62 = vld [vmem:[#allocation10 + $0xf0] sm:$0xff] }
 0x24e   : > { %2137 = vmatprep.subr.bf16.mxu0 %v2136_v36 }
 0x251   : > { %2139 = vmatpush1.bf16.msra.mxu0 %v2138_v39 }
 0x252   : > { %2141 = vmatprep.subr.bf16.mxu0 %v2140_v42 }
 0x253   : > { %v2411_v3 = vpop.eup %2410 }
 0x254   : > { %v846_v4 = vmul.f32 %v2411_v3, %v840_v1  ;;  %v2154_v1 = vpack.c.bf16 %v1047_v62, %v1045_v61  ;;  %v1150_v3 = vld [vmem:[#allocation11] sm:$0xff] }
 0x255   : > { %2143 = vmatpush1.bf16.msra.mxu0 %v2142_v45 }
 0x256   : > { %v852_v6 = vmul.f32 %v851_v2, %v846_v4  ;;  %2145 = vmatprep.subr.bf16.mxu0 %v2144_v48  ;;  %v1151_v4 = vld [vmem:[#allocation11 + $0x8] sm:$0xff] }
 0x257   : > { %v2413_v8 = vpop.eup %2412 }
 0x258   : > { %v858_v9 = vadd.f32 %v857_v5, %v852_v6  ;;  %v847_v10 = vmul.f32 %v2413_v8, %v841_v7  ;;  %v2156_v6 = vpack.c.bf16 %v1151_v4, %v1150_v3  ;;  %v1153_v7 = vld [vmem:[#allocation11 + $0x18] sm:$0xff] }
 0x259   : > { %2147 = vmatpush1.bf16.msra.mxu0 %v2146_v51 }
 0x25a   : > { %v860_v11 = vmax.f32 %v858_v9, 0.0  ;;  %v853_v12 = vmul.f32 %v851_v2, %v847_v10  ;;  %2149 = vmatprep.subr.bf16.mxu0 %v2148_v54  ;;  %v2841_v2 = vmov 0.0   ;;  %2157 = vmatprep.subr.bf16.mxu1 %v2156_v6  ;;  %v862_v9 = vld [vmem:[#allocation8] sm:$0xff] }
 0x25b   : > { %1124 = vmatprep.mubr.f32.mxu0 %v2841_v2  ;;  %v882_v10 = vrot.slane %v862_v9, %v3278_v14  ;;  %v1005_v56 = vrot.slane %v862_v9, %v3281_v63 }
 0x25c   : > { %1987 = vmatprep.mubr.f32.mxu1 %v860_v11  ;;  %v859_v16 = vadd.f32 %v857_v5, %v853_v12  ;;  %v1152_v5 = vld [vmem:[#allocation11 + $0x10] sm:$0xff] }
 0x25d   : > { %2151 = vmatpush1.bf16.msra.mxu0 %v2150_v57  ;;  %v2160_v8 = vpack.c.bf16 %v1153_v7, %v1152_v5  ;;  %v1154_v7 = vld [vmem:[#allocation11 + $0x20] sm:$0xff] }
 0x25e   : > { %v861_v17 = vmax.f32 %v859_v16, 0.0  ;;  %2153 = vmatprep.subr.bf16.mxu0 %v2152_v60  ;;  %v1011_v60 = vrot.slane %v862_v9, %v3283_v0  ;;  %v1158_v9 = vld [vmem:[#allocation11 + $0x40] sm:$0xff] }
 0x260   : > { %1988 = vmatmul.mubr.f32.vlgmr.msra.gmra.mrb[0].mxu1 %v861_v17 }
 0x261   : > { %2155 = vmatpush1.bf16.msra.mxu0 %v2154_v1  ;;  %2159 = vmatpush3.bf16.msra.mxu1 %v2156_v6 }
 0x262   : > { %2161 = vmatprep.subr.bf16.mxu1 %v2160_v8 }
 0x265   : > { %2163 = vmatpush3.bf16.msra.mxu1 %v2160_v8  ;;  %v1155_v8 = vld [vmem:[#allocation11 + $0x28] sm:$0xff] }
 0x333   : > { %v1989_v11 = vpop.f32.mrb[0].mxu1 }
 0x334   : > { %v955_v12 = vadd.f32 %v1989_v11, %v882_v10  ;;  %v949_v16 = vpop.f32.mrb[1].mxu1  ;;  %v1156_v11 = vld [vmem:[#allocation11 + $0x30] sm:$0xff] }
 0x335   : > { %v950_v17 = vadd.f32 %v949_v16, %v882_v10  ;;  %v2164_v10 = vpack.c.bf16 %v1155_v8, %v1154_v7  ;;  %v1317_v7 = vld [vmem:[#allocation14 + $0x68] sm:$0xff] }
 0x336   : > { %v964_v13 = vrot.slane %v955_v12, 4  ;;  %v973_v18 = vmul.f32 %v955_v12, %v955_v12 }
 0x337   : > { %v958_v19 = vrot.slane %v950_v17, 4  ;;  %v972_v20 = vmul.f32 %v950_v17, %v950_v17  ;;  %2165 = vmatprep.subr.bf16.mxu1 %v2164_v10 }
 0x338   : > { %v965_v21 = vadd.f32 %v964_v13, %v955_v12  ;;  %v980_v22 = vrot.slane %v973_v18, 4  ;;  %2167 = vmatpush3.bf16.msra.mxu1 %v2164_v10  ;;  %v1318_v10 = vld [vmem:[#allocation14 + $0x70] sm:$0xff] }
 0x339   : > { %v959_v15 = vadd.f32 %v958_v19, %v950_v17  ;;  %v974_v23 = vrot.slane %v972_v20, 4  ;;  %v1161_v19 = vld [vmem:[#allocation11 + $0x58] sm:$0xff] }
 0x33a   : > { %v966_v24 = vrot.slane %v965_v21, 2  ;;  %v981_v25 = vadd.f32 %v980_v22, %v973_v18  ;;  %v1160_v18 = vld [vmem:[#allocation11 + $0x50] sm:$0xff]  ;;  %v1163_v22 = vld [vmem:[#allocation11 + $0x68] sm:$0xff] }
 0x33b   : > { %v960_v26 = vrot.slane %v959_v15, 2  ;;  %v975_v27 = vadd.f32 %v974_v23, %v972_v20  ;;  %v1162_v20 = vld [vmem:[#allocation11 + $0x60] sm:$0xff]  ;;  %v1164_v23 = vld [vmem:[#allocation11 + $0x70] sm:$0xff] }
 0x33c   : > { %v967_v28 = vadd.f32 %v966_v24, %v965_v21  ;;  %v982_v29 = vrot.slane %v981_v25, 2  ;;  %v2176_v21 = vpack.c.bf16 %v1161_v19, %v1160_v18  ;;  %v1165_v24 = vld [vmem:[#allocation11 + $0x78] sm:$0xff] }
 0x33d   : > { %v961_v30 = vadd.f32 %v960_v26, %v959_v15  ;;  %v976_v31 = vrot.slane %v975_v27, 2  ;;  %v2180_v15 = vpack.c.bf16 %v1163_v22, %v1162_v20  ;;  %v1016_v26 = vld [vmem:[%s3379_s6] ss:$8 sm:$0x3] }
 0x33e   : > { %v968_v32 = vrot.slane %v967_v28, 1  ;;  %v983_v33 = vadd.f32 %v982_v29, %v981_v25  ;;  %v2184_v25 = vpack.c.bf16 %v1165_v24, %v1164_v23 }
 0x33f   : > { %v962_v34 = vrot.slane %v961_v30, 1  ;;  %v977_v35 = vadd.f32 %v976_v31, %v975_v27  ;;  %v1053_v27 = vrot.slane %v1016_v26, %v3278_v14 }
 0x340   : > { %v969_v36 = vadd.f32 %v968_v32, %v967_v28  ;;  %v984_v37 = vrot.slane %v983_v33, 1  ;;  %v1057_v28 = vrot.slane %v1016_v26, %v3281_v63 }
 0x341   : > { %v963_v38 = vadd.f32 %v962_v34, %v961_v30  ;;  %v978_v39 = vrot.slane %v977_v35, 1 }
 0x342   : > { %v971_v40 = vmul.f32 0.125, %v969_v36  ;;  %v985_v41 = vadd.f32 %v984_v37, %v983_v33 }
 0x343   : > { %v970_v42 = vmul.f32 0.125, %v963_v38  ;;  %v979_v43 = vadd.f32 %v978_v39, %v977_v35 }
 0x344   : > { %v987_v44 = vmul.f32 0.125, %v985_v41  ;;  %v989_v45 = vmul.f32 %v971_v40, %v971_v40  ;;  %v995_v54 = vsub.f32 %v955_v12, %v971_v40  ;;  %v1157_v12 = vld [vmem:[#allocation11 + $0x38] sm:$0xff]  ;;  %v1137_v41 = vld [vmem:[%s677_s14] sm:$0xff] }
 0x345   : > { %v986_v46 = vmul.f32 0.125, %v979_v43  ;;  %v988_v47 = vmul.f32 %v970_v42, %v970_v42  ;;  %v994_v57 = vsub.f32 %v950_v17, %v970_v42  ;;  %v2168_v16 = vpack.c.bf16 %v1157_v12, %v1156_v11  ;;  %v1159_v17 = vld [vmem:[#allocation11 + $0x48] sm:$0xff]  ;;  %v1319_v11 = vld [vmem:[#allocation14 + $0x78] sm:$0xff] }
 0x346   : > { %v991_v48 = vsub.f32 %v987_v44, %v989_v45  ;;  %v2172_v13 = vpack.c.bf16 %v1159_v17, %v1158_v9  ;;  %v1138_v44 = vld [vmem:[%s677_s14 + $0x8] sm:$0xff]  ;;  %v2216_v12 = vpack.c.bf16 %v1319_v11, %v1318_v10 }
 0x347   : > { %v990_v49 = vsub.f32 %v986_v46, %v988_v47  ;;  %2169 = vmatprep.subr.bf16.mxu1 %v2168_v16  ;;  %v1459_v11 = vld [vmem:[#allocation17 + $0x8] sm:$0xff] }
 0x348   : > { %v993_v50 = vmax.f32 %v991_v48, 0.0  ;;  %2171 = vmatpush3.bf16.msra.mxu1 %v2168_v16  ;;  %v1149_v16 = vld [vmem:[#allocation13] sm:$0xff] }
 0x349   : > { %v992_v51 = vmax.f32 %v990_v49, 0.0  ;;  %2173 = vmatprep.subr.bf16.mxu1 %v2172_v13  ;;  %v1304_v49 = vld [vmem:[#allocation14] sm:$0xff]  ;;  %v1169_v9 = vrot.slane %v1149_v16, %v3278_v14 }
 0x34a   : > { %v997_v52 = vadd.f32 1e-05, %v993_v50  ;;  %v1305_v50 = vld [vmem:[#allocation14 + $0x8] sm:$0xff] }
 0x34b   : > { %v996_v53 = vadd.f32 1e-05, %v992_v51  ;;  %v2188_v51 = vpack.c.bf16 %v1305_v50, %v1304_v49 }
 0x34c   : > { %2414 = vrsqrt.f32 %v997_v52  ;;  %2175 = vmatpush3.bf16.msra.mxu1 %v2172_v13  ;;  %v1306_v52 = vld [vmem:[#allocation14 + $0x10] sm:$0xff] }
 0x34d   : > { %2416 = vrsqrt.f32 %v996_v53  ;;  %2177 = vmatprep.subr.bf16.mxu1 %v2176_v21  ;;  %2189 = vmatprep.subr.bf16.mxu0 %v2188_v51  ;;  %v1307_v53 = vld [vmem:[#allocation14 + $0x18] sm:$0xff] }
 0x350   : > { %2179 = vmatpush3.bf16.msra.mxu1 %v2176_v21 }
 0x351   : > { %2181 = vmatprep.subr.bf16.mxu1 %v2180_v15 }
 0x354   : > { %2183 = vmatpush3.bf16.msra.mxu1 %v2180_v15 }
 0x355   : > { %2185 = vmatprep.subr.bf16.mxu1 %v2184_v25 }
 0x356   : > { %v2415_v55 = vpop.eup %2414 }
 0x357   : > { %v2417_v58 = vpop.eup %2416  ;;  %v1001_v59 = vmul.f32 %v2415_v55, %v995_v54  ;;  %v2192_v54 = vpack.c.bf16 %v1307_v53, %v1306_v52  ;;  %v1308_v55 = vld [vmem:[#allocation14 + $0x20] sm:$0xff] }
 0x358   : > { %v1000_v61 = vmul.f32 %v2417_v58, %v994_v57  ;;  %2187 = vmatpush3.bf16.msra.mxu1 %v2184_v25  ;;  %v1310_v58 = vld [vmem:[#allocation14 + $0x30] sm:$0xff] }
 0x359   : > { %v1007_v1 = vmul.f32 %v1005_v56, %v1001_v59  ;;  %v1311_v59 = vld [vmem:[#allocation14 + $0x38] sm:$0xff] }
 0x35a   : > { %v1006_v62 = vmul.f32 %v1005_v56, %v1000_v61  ;;  %v1309_v56 = vld [vmem:[#allocation14 + $0x28] sm:$0xff]  ;;  %v1312_v61 = vld [vmem:[#allocation14 + $0x40] sm:$0xff] }
 0x35b   : > { %v1013_v5 = vadd.f32 %v1011_v60, %v1007_v1  ;;  %v2196_v57 = vpack.c.bf16 %v1309_v56, %v1308_v55 }
 0x35c   : > { %v1012_v3 = vadd.f32 %v1011_v60, %v1006_v62  ;;  %v2200_v60 = vpack.c.bf16 %v1311_v59, %v1310_v58  ;;  %v1313_v62 = vld [vmem:[#allocation14 + $0x48] sm:$0xff]  ;;  %v1292_v58 = vrot.slane %v1149_v16, %v3281_v63 }
 0x35d   : > { %v1015_v6 = vmax.f32 %v1013_v5, 0.0  ;;  %v2204_v1 = vpack.c.bf16 %v1313_v62, %v1312_v61 }
 0x35e   : > { %v1014_v4 = vmax.f32 %v1012_v3, 0.0  ;;  %v1314_v3 = vld [vmem:[#allocation14 + $0x50] sm:$0xff] }
 0x360   : > { %1125 = vmatmul.mubr.f32.vlgmr.msra.gmra.mrb[4].mxu0 %v1014_v4  ;;  %v1315_v4 = vld [vmem:[#allocation14 + $0x58] sm:$0xff] }
 0x361   : > { %1130 = vmatprep.mubr.f32.mxu0 %v2841_v2  ;;  %2191 = vmatpush3.bf16.msra.mxu0 %v2188_v51  ;;  %v2208_v5 = vpack.c.bf16 %v1315_v4, %v1314_v3 }
 0x362   : > { %2193 = vmatprep.subr.bf16.mxu0 %v2192_v54 }
 0x364   : > { %1131 = vmatmul.mubr.f32.gmra.mrb[6].mxu0 %v1015_v6  ;;  %v1316_v6 = vld [vmem:[#allocation14 + $0x60] sm:$0xff] }
 0x365   : > { %2195 = vmatpush3.bf16.msra.mxu0 %v2192_v54  ;;  %v2212_v8 = vpack.c.bf16 %v1317_v7, %v1316_v6 }
 0x366   : > { %2197 = vmatprep.subr.bf16.mxu0 %v2196_v57 }
 0x369   : > { %2199 = vmatpush3.bf16.msra.mxu0 %v2196_v57 }
 0x36a   : > { %2201 = vmatprep.subr.bf16.mxu0 %v2200_v60 }
 0x36d   : > { %2203 = vmatpush3.bf16.msra.mxu0 %v2200_v60 }
 0x36e   : > { %2205 = vmatprep.subr.bf16.mxu0 %v2204_v1 }
 0x371   : > { %2207 = vmatpush3.bf16.msra.mxu0 %v2204_v1  ;;  %v1298_v1 = vrot.slane %v1149_v16, %v3283_v0 }
 0x372   : > { %2209 = vmatprep.subr.bf16.mxu0 %v2208_v5 }
 0x375   : > { %2211 = vmatpush3.bf16.msra.mxu0 %v2208_v5 }
 0x376   : > { %2213 = vmatprep.subr.bf16.mxu0 %v2212_v8 }
 0x379   : > { %2215 = vmatpush3.bf16.msra.mxu0 %v2212_v8 }
 0x37a   : > { %2217 = vmatprep.subr.bf16.mxu0 %v2216_v12 }
 0x37d   : > { %2219 = vmatpush3.bf16.msra.mxu0 %v2216_v12  ;;  %v1461_v12 = vld [vmem:[#allocation17 + $0x18] sm:$0xff] }
 0x433   : > { %v1126_v29 = vpop.f32.mrb[4].mxu0 }
 0x434   : > { %v1127_v30 = vadd.f32 %v1126_v29, %v1053_v27  ;;  %v1128_v31 = vpop.f32.mrb[5].mxu0 }
 0x435   : > { %v1129_v32 = vadd.f32 %v1128_v31, %v1057_v28 }
 0x436   : > { %1582 = vst [vmem:[%s3301_s4] sm:$0xff] %v1127_v30 }
 0x437   : > { %v1139_v33 = vmul.f32 0.5, %v1129_v32  ;;  %1584 = vst [vmem:[%s3301_s4 + $0x8] sm:$0xff] %v1129_v32  ;;  %v1132_v34 = vpop.f32.mrb[6].mxu0 }
 0x438   : > { %v1133_v35 = vadd.f32 %v1132_v34, %v1053_v27  ;;  %v1134_v36 = vpop.f32.mrb[7].mxu0 }
 0x439   : > { %v1141_v37 = vmul.f32 1.442695, %v1139_v33  ;;  %v1135_v38 = vadd.f32 %v1134_v36, %v1057_v28 }
 0x43a   : > { %1583 = vst [vmem:[%s3301_s4 + $0x18] sm:$0xff] %v1133_v35 }
 0x43b   : > { %2418 = vpow2.f32 %v1141_v37  ;;  %v1140_v39 = vmul.f32 0.5, %v1135_v38  ;;  %1585 = vst [vmem:[%s3301_s4 + $0x20] sm:$0xff] %v1135_v38 }
 0x43d   : > { %v1143_v40 = vmul.f32 1.442695, %v1140_v39 }
 0x43f   : > { %2420 = vpow2.f32 %v1143_v40 }
 0x445   : > { %v2419_v42 = vpop.eup %2418 }
 0x446   : > { %v1145_v43 = vmul.f32 %v2419_v42, %v1137_v41 }
 0x448   : > { %v1147_v45 = vadd.f32 %v1145_v43, %v1127_v30 }
 0x449   : > { %v2421_v46 = vpop.eup %2420 }
 0x44a   : > { %2022 = vmatprep.mubr.f32.mxu1 %v1147_v45  ;;  %1586 = vst [vmem:[%s3301_s4 + $0x10] sm:$0xff] %v1147_v45  ;;  %v1146_v47 = vmul.f32 %v2421_v46, %v1138_v44 }
 0x44c   : > { %v1148_v48 = vadd.f32 %v1146_v47, %v1133_v35 }
 0x44e   : > { %2023 = vmatmul.mubr.f32.vlgmr.msra.gmra.mrb[2].mxu1 %v1148_v48  ;;  %1587 = vst [vmem:[%s3301_s4 + $0x28] sm:$0xff] %v1148_v48  ;;  %s2842_s4 = smov [#allocation20]  }
 0x44f   : > { %1565 = vmatprep.mubr.f32.mxu1 %v2841_v2  ;;  %s2742_s18 = sshll.u32 %s2842_s4, 4  ;;  %s2743_s18 = int_to_ptr.vmem [resolvable:$false] %s2742_s18 }
 0x450   : > { %s2744_s16 = scalar_lea.vmem %s2743_s18, 1024  ;;  %p2745_p5 = scmp.lt.s32.totalorder %s3325_s23, %s2743_s18 }
 0x451   : > { %p2746_p9 = scmp.lt.s32.totalorder %s2744_s16, %s2738_s22 }
 0x453   : > { %p2747_p12 = por %p2746_p9, %p2745_p5 }
 0x455   : > { %p2748_p10 = pnand %p2747_p12, %p2741_p6 }
 0x521   : > { %v2024_v17 = vpop.f32.mrb[2].mxu1 }
 0x522   : > { %v1242_v13 = vadd.f32 %v2024_v17, %v1169_v9  ;;  %v1236_v18 = vpop.f32.mrb[3].mxu1  ;;  %v1458_v17 = vld [vmem:[#allocation17] sm:$0xff] }
 0x523   : > { %v1237_v19 = vadd.f32 %v1236_v18, %v1169_v9  ;;  %v2220_v9 = vpack.c.bf16 %v1461_v12, %v1459_v11 }
 0x524   : > { %v1251_v20 = vrot.slane %v1242_v13, 4  ;;  %v1260_v21 = vmul.f32 %v1242_v13, %v1242_v13 }
 0x525   : > { %v1245_v22 = vrot.slane %v1237_v19, 4  ;;  %v1259_v15 = vmul.f32 %v1237_v19, %v1237_v19  ;;  %2221 = vmatprep.subr.bf16.mxu1 %v2220_v9 }
 0x526   : > { %v1252_v23 = vadd.f32 %v1251_v20, %v1242_v13  ;;  %v1267_v24 = vrot.slane %v1260_v21, 4  ;;  %v1465_v20 = vld [vmem:[#allocation17 + $0x38] sm:$0xff] }
 0x527   : > { %v1246_v25 = vadd.f32 %v1245_v22, %v1237_v19  ;;  %v1261_v26 = vrot.slane %v1259_v15, 4  ;;  %v1464_v22 = vld [vmem:[#allocation17 + $0x30] sm:$0xff] }
 0x528   : > { %v1253_v27 = vrot.slane %v1252_v23, 2  ;;  %v1268_v28 = vadd.f32 %v1267_v24, %v1260_v21  ;;  %v1462_v21 = vld [vmem:[#allocation17 + $0x20] sm:$0xff]  ;;  %v1469_v24 = vld [vmem:[#allocation17 + $0x58] sm:$0xff] }
 0x529   : > { %v1247_v29 = vrot.slane %v1246_v25, 2  ;;  %v1262_v30 = vadd.f32 %v1261_v26, %v1259_v15  ;;  %v2226_v15 = vpack.c.bf16 %v1464_v22, %v1462_v21  ;;  %v1466_v26 = vld [vmem:[#allocation17 + $0x40] sm:$0xff] }
 0x52a   : > { %v1254_v31 = vadd.f32 %v1253_v27, %v1252_v23  ;;  %v1269_v32 = vrot.slane %v1268_v28, 2  ;;  %v1467_v23 = vld [vmem:[#allocation17 + $0x48] sm:$0xff]  ;;  %v1468_v27 = vld [vmem:[#allocation17 + $0x50] sm:$0xff] }
 0x52b   : > { %v1248_v33 = vadd.f32 %v1247_v29, %v1246_v25  ;;  %v1263_v34 = vrot.slane %v1262_v30, 2  ;;  %v2228_v25 = vpack.c.bf16 %v1469_v24, %v1467_v23  ;;  %v1471_v29 = vld [vmem:[#allocation17 + $0x68] sm:$0xff] }
 0x52c   : > { %v1255_v35 = vrot.slane %v1254_v31, 1  ;;  %v1270_v36 = vadd.f32 %v1269_v32, %v1268_v28  ;;  %v2230_v28 = vpack.c.bf16 %v1468_v27, %v1466_v26  ;;  %v1470_v32 = vld [vmem:[#allocation17 + $0x60] sm:$0xff] }
 0x52d   : > { %v1249_v37 = vrot.slane %v1248_v33, 1  ;;  %v1264_v38 = vadd.f32 %v1263_v34, %v1262_v30  ;;  %v1473_v30 = vld [vmem:[#allocation17 + $0x78] sm:$0xff] }
 0x52e   : > { %v1256_v39 = vadd.f32 %v1255_v35, %v1254_v31  ;;  %v1271_v40 = vrot.slane %v1270_v36, 1  ;;  %v2232_v31 = vpack.c.bf16 %v1473_v30, %v1471_v29  ;;  %v1475_v35 = vld [vmem:[#allocation17 + $0x88] sm:$0xff] }
 0x52f   : > { %v1250_v41 = vadd.f32 %v1249_v37, %v1248_v33  ;;  %v1265_v42 = vrot.slane %v1264_v38, 1  ;;  %v1472_v33 = vld [vmem:[#allocation17 + $0x70] sm:$0xff] }
 0x530   : > { %v1258_v43 = vmul.f32 0.125, %v1256_v39  ;;  %v1272_v44 = vadd.f32 %v1271_v40, %v1270_v36  ;;  %v2234_v34 = vpack.c.bf16 %v1472_v33, %v1470_v32  ;;  %v1477_v36 = vld [vmem:[#allocation17 + $0x98] sm:$0xff]  ;;  %v1476_v39 = vld [vmem:[#allocation17 + $0x90] sm:$0xff] }
 0x531   : > { %v1257_v45 = vmul.f32 0.125, %v1250_v41  ;;  %v1266_v46 = vadd.f32 %v1265_v42, %v1264_v38  ;;  %v2236_v37 = vpack.c.bf16 %v1477_v36, %v1475_v35  ;;  %v1474_v38 = vld [vmem:[#allocation17 + $0x80] sm:$0xff]  ;;  %v1479_v41 = vld [vmem:[#allocation17 + $0xa8] sm:$0xff]  ;;  %v1481_v42 = vld [vmem:[#allocation17 + $0xb8] sm:$0xff] }
 0x532   : > { %v1274_v47 = vmul.f32 0.125, %v1272_v44  ;;  %v1276_v48 = vmul.f32 %v1258_v43, %v1258_v43  ;;  %v1282_v57 = vsub.f32 %v1242_v13, %v1258_v43  ;;  %v1460_v13 = vld [vmem:[#allocation17 + $0x10] sm:$0xff]  ;;  %v2238_v40 = vpack.c.bf16 %v1476_v39, %v1474_v38  ;;  %v1478_v44 = vld [vmem:[#allocation17 + $0xa0] sm:$0xff] }
 0x533   : > { %v1273_v49 = vmul.f32 0.125, %v1266_v46  ;;  %v1275_v50 = vmul.f32 %v1257_v45, %v1257_v45  ;;  %v1281_v60 = vsub.f32 %v1237_v19, %v1257_v45  ;;  %v2222_v18 = vpack.c.bf16 %v1460_v13, %v1458_v17  ;;  %v1463_v19 = vld [vmem:[#allocation17 + $0x28] sm:$0xff]  ;;  %v1480_v45 = vld [vmem:[#allocation17 + $0xb0] sm:$0xff] }
 0x534   : > { %v1278_v51 = vsub.f32 %v1274_v47, %v1276_v48  ;;  %v2224_v16 = vpack.c.bf16 %v1465_v20, %v1463_v19  ;;  %v2240_v43 = vpack.c.bf16 %v1481_v42, %v1479_v41  ;;  %v2242_v46 = vpack.c.bf16 %v1480_v45, %v1478_v44  ;;  %v1483_v47 = vld [vmem:[#allocation17 + $0xc8] sm:$0xff]  ;;  %v1485_v48 = vld [vmem:[#allocation17 + $0xd8] sm:$0xff] }
 0x535   : > { %v1277_v52 = vsub.f32 %v1273_v49, %v1275_v50  ;;  %2223 = vmatpush1.bf16.msra.mxu1 %v2222_v18  ;;  %v2244_v49 = vpack.c.bf16 %v1485_v48, %v1483_v47  ;;  %v1482_v50 = vld [vmem:[#allocation17 + $0xc0] sm:$0xff] }
 0x536   : > { %v1280_v53 = vmax.f32 %v1278_v51, 0.0  ;;  %2225 = vmatprep.subr.bf16.mxu1 %v2224_v16  ;;  %v1484_v51 = vld [vmem:[#allocation17 + $0xd0] sm:$0xff] }
 0x537   : > { %v1279_v54 = vmax.f32 %v1277_v52, 0.0  ;;  %v2246_v52 = vpack.c.bf16 %v1484_v51, %v1482_v50 }
 0x538   : > { %v1284_v55 = vadd.f32 1e-05, %v1280_v53  ;;  %v1487_v53 = vld [vmem:[#allocation17 + $0xe8] sm:$0xff] }
 0x539   : > { %v1283_v56 = vadd.f32 1e-05, %v1279_v54  ;;  %2227 = vmatpush1.bf16.msra.mxu1 %v2226_v15  ;;  %v1489_v54 = vld [vmem:[#allocation17 + $0xf8] sm:$0xff] }
 0x53a   : > { %2422 = vrsqrt.f32 %v1284_v55  ;;  %2229 = vmatprep.subr.bf16.mxu1 %v2228_v25  ;;  %v1486_v55 = vld [vmem:[#allocation17 + $0xe0] sm:$0xff] }
 0x53b   : > { %2424 = vrsqrt.f32 %v1283_v56  ;;  %v2248_v56 = vpack.c.bf16 %v1489_v54, %v1487_v53 }
 0x53d   : > { %2231 = vmatpush1.bf16.msra.mxu1 %v2230_v28 }
 0x53e   : > { %2233 = vmatprep.subr.bf16.mxu1 %v2232_v31 }
 0x541   : > { %2235 = vmatpush1.bf16.msra.mxu1 %v2234_v34 }
 0x542   : > { %2237 = vmatprep.subr.bf16.mxu1 %v2236_v37 }
 0x544   : > { %v2423_v59 = vpop.eup %2422 }
 0x545   : > { %v2425_v61 = vpop.eup %2424  ;;  %v1288_v62 = vmul.f32 %v2423_v59, %v1282_v57  ;;  %2239 = vmatpush1.bf16.msra.mxu1 %v2238_v40  ;;  %v1488_v57 = vld [vmem:[#allocation17 + $0xf0] sm:$0xff]  ;;  %v1303_v59 = vld [vmem:[#allocation16] sm:$0xff] }
 0x546   : > { %v1287_v3 = vmul.f32 %v2425_v61, %v1281_v60  ;;  %2241 = vmatprep.subr.bf16.mxu1 %v2240_v43  ;;  %v1323_v60 = vrot.slane %v1303_v59, %v3278_v14  ;;  %v1446_v45 = vrot.slane %v1303_v59, %v3281_v63 }
 0x547   : > { %v1294_v4 = vmul.f32 %v1292_v58, %v1288_v62 }
 0x548   : > { %v1293_v5 = vmul.f32 %v1292_v58, %v1287_v3  ;;  %v2250_v58 = vpack.c.bf16 %v1488_v57, %v1486_v55  ;;  %v1457_v57 = vld [vmem:[#allocation19] ss:$8 sm:$0x3] }
 0x549   : > { %v1300_v6 = vadd.f32 %v1298_v1, %v1294_v4  ;;  %2243 = vmatpush1.bf16.msra.mxu1 %v2242_v46 }
 0x54a   : > { %v1299_v7 = vadd.f32 %v1298_v1, %v1293_v5  ;;  %2245 = vmatprep.subr.bf16.mxu1 %v2244_v49  ;;  %v1452_v49 = vrot.slane %v1303_v59, %v3283_v0 }
 0x54b   : > { %v1302_v10 = vmax.f32 %v1300_v6, 0.0 }
 0x54c   : > { %v1301_v8 = vmax.f32 %v1299_v7, 0.0 }
 0x54d   : > { %2247 = vmatpush1.bf16.msra.mxu1 %v2246_v52 }
 0x54e   : > { %2057 = vmatprep.mubr.f32.mxu0 %v1301_v8  ;;  %2249 = vmatprep.subr.bf16.mxu1 %v2248_v56 }
 0x54f   : > { %2058 = vmatmul.mubr.f32.vlgmr.msra.gmra.mrb[8].mxu0 %v1302_v10 }
 0x551   : > { %2251 = vmatpush1.bf16.msra.mxu1 %v2250_v58  ;;  %v1494_v58 = vrot.slane %v1457_v57, %v3278_v14 }
 0x622   : > { %v2059_v61 = vpop.f32.mrb[8].mxu0 }
 0x623   : > { %v1396_v62 = vadd.f32 %v2059_v61, %v1323_v60  ;;  %v1390_v1 = vpop.f32.mrb[9].mxu0 }
 0x624   : > { %v1391_v3 = vadd.f32 %v1390_v1, %v1323_v60  ;;  %v1498_v60 = vrot.slane %v1457_v57, %v3281_v63 }
 0x625   : > { %v1405_v4 = vrot.slane %v1396_v62, 4  ;;  %v1414_v5 = vmul.f32 %v1396_v62, %v1396_v62 }
 0x626   : > { %v1399_v6 = vrot.slane %v1391_v3, 4  ;;  %v1413_v7 = vmul.f32 %v1391_v3, %v1391_v3 }
 0x627   : > { %v1406_v8 = vadd.f32 %v1405_v4, %v1396_v62  ;;  %v1421_v10 = vrot.slane %v1414_v5, 4 }
 0x628   : > { %v1400_v11 = vadd.f32 %v1399_v6, %v1391_v3  ;;  %v1415_v12 = vrot.slane %v1413_v7, 4 }
 0x629   : > { %v1407_v9 = vrot.slane %v1406_v8, 2  ;;  %v1422_v17 = vadd.f32 %v1421_v10, %v1414_v5 }
 0x62a   : > { %v1401_v13 = vrot.slane %v1400_v11, 2  ;;  %v1416_v18 = vadd.f32 %v1415_v12, %v1413_v7 }
 0x62b   : > { %v1408_v19 = vadd.f32 %v1407_v9, %v1406_v8  ;;  %v1423_v20 = vrot.slane %v1422_v17, 2 }
 0x62c   : > { %v1402_v16 = vadd.f32 %v1401_v13, %v1400_v11  ;;  %v1417_v21 = vrot.slane %v1416_v18, 2 }
 0x62d   : > { %v1409_v22 = vrot.slane %v1408_v19, 1  ;;  %v1424_v15 = vadd.f32 %v1423_v20, %v1422_v17 }
 0x62e   : > { %v1403_v23 = vrot.slane %v1402_v16, 1  ;;  %v1418_v24 = vadd.f32 %v1417_v21, %v1416_v18 }
 0x62f   : > { %v1410_v25 = vadd.f32 %v1409_v22, %v1408_v19  ;;  %v1425_v26 = vrot.slane %v1424_v15, 1 }
 0x630   : > { %v1404_v27 = vadd.f32 %v1403_v23, %v1402_v16  ;;  %v1419_v28 = vrot.slane %v1418_v24, 1 }
 0x631   : > { %v1412_v29 = vmul.f32 0.125, %v1410_v25  ;;  %v1426_v30 = vadd.f32 %v1425_v26, %v1424_v15 }
 0x632   : > { %v1411_v31 = vmul.f32 0.125, %v1404_v27  ;;  %v1420_v32 = vadd.f32 %v1419_v28, %v1418_v24 }
 0x633   : > { %v1428_v33 = vmul.f32 0.125, %v1426_v30  ;;  %v1430_v34 = vmul.f32 %v1412_v29, %v1412_v29  ;;  %v1436_v43 = vsub.f32 %v1396_v62, %v1412_v29 }
 0x634   : > { %v1427_v35 = vmul.f32 0.125, %v1420_v32  ;;  %v1429_v36 = vmul.f32 %v1411_v31, %v1411_v31  ;;  %v1435_v46 = vsub.f32 %v1391_v3, %v1411_v31 }
 0x635   : > { %v1432_v37 = vsub.f32 %v1428_v33, %v1430_v34 }
 0x636   : > { %v1431_v38 = vsub.f32 %v1427_v35, %v1429_v36 }
 0x637   : > { %v1434_v39 = vmax.f32 %v1432_v37, 0.0 }
 0x638   : > { %v1433_v40 = vmax.f32 %v1431_v38, 0.0 }
 0x639   : > { %v1438_v41 = vadd.f32 1e-05, %v1434_v39 }
 0x63a   : > { %v1437_v42 = vadd.f32 1e-05, %v1433_v40 }
 0x63b   : > { %2426 = vrsqrt.f32 %v1438_v41 }
 0x63c   : > { %2428 = vrsqrt.f32 %v1437_v42 }
 0x645   : > { %v2427_v44 = vpop.eup %2426 }
 0x646   : > { %v2429_v47 = vpop.eup %2428  ;;  %v1442_v48 = vmul.f32 %v2427_v44, %v1436_v43 }
 0x647   : > { %v1441_v50 = vmul.f32 %v2429_v47, %v1435_v46 }
 0x648   : > { %v1448_v52 = vmul.f32 %v1446_v45, %v1442_v48 }
 0x649   : > { %v1447_v51 = vmul.f32 %v1446_v45, %v1441_v50 }
 0x64a   : > { %v1454_v55 = vadd.f32 %v1452_v49, %v1448_v52 }
 0x64b   : > { %v1453_v53 = vadd.f32 %v1452_v49, %v1447_v51 }
 0x64c   : > { %v1456_v56 = vmax.f32 %v1454_v55, 0.0 }
 0x64d   : > { %v1455_v54 = vmax.f32 %v1453_v53, 0.0 }
 0x64f   : > { %1566 = vmatmul.mubr.f32.vlgmr.msra.gmra.mrb[4].mxu1 %v1455_v54 }
 0x650   : > { %1571 = vmatprep.mubr.f32.mxu1 %v2841_v2 }
 0x653   : > { %1572 = vmatmul.mubr.f32.gmra.mrb[6].mxu1 %v1456_v56 }
 0x722   : > { %v1567_v0 = vpop.f32.mrb[4].mxu1 }
 0x723   : > { %v1568_v59 = vadd.f32 %v1567_v0, %v1494_v58  ;;  %v1569_v61 = vpop.f32.mrb[5].mxu1 }
 0x724   : > { %v1570_v62 = vadd.f32 %v1569_v61, %v1498_v60 }
 0x725   : > { %1578 = vst [vmem:[%s657_s26] sm:$0xff] %v1568_v59 }
 0x726   : > { %1579 = vst [vmem:[%s657_s26 + $0x8] sm:$0xff] %v1570_v62  ;;  %v1573_v2 = vpop.f32.mrb[6].mxu1 }
 0x727   : > { %v1574_v1 = vadd.f32 %v1573_v2, %v1494_v58  ;;  %v1575_v14 = vpop.f32.mrb[7].mxu1 }
 0x728   : > { %v1576_v63 = vadd.f32 %v1575_v14, %v1498_v60 }
 0x729   : > { %1580 = vst [vmem:[%s657_s26 + $0x10] sm:$0xff] %v1574_v1 }
 0x72a   : > { %1581 = vst [vmem:[%s657_s26 + $0x18] sm:$0xff] %v1576_v63 }
 0x72b   : > { %2751 = shalt.err (!%p2748_p10)
}
 0x72c   : > { %s2752_s29 = scalar_lea.hbm %s3330_s21, 512  ;;  %s2756_s24 = scalar_lea.hbm %s3442_s28, 1024 }
 0x72d   : > { %p2753_p2 = scmp.ne.s32.totalorder %s3330_s21, %s2752_s29  ;;  %p2757_p7 = scmp.lt.u32.totalorder %s3330_s21, %s3442_s28 }
 0x72e   : > { %p2758_p8 = scmp.lt.u32.totalorder %s2756_s24, %s2752_s29  ;;  %p2760_p13 = scmp.lt.u32.totalorder %s2752_s29, %s3330_s21 }
 0x72f   : > { %p2754_p3 = pnand %p2753_p2, %p3443_p1 }
 0x730   : > { %p2759_p11 = por %p2758_p8, %p2757_p7 }
 0x731   : > { %p2755_p4 = pneg %p2754_p3 }
 0x732   : > { %p2761_p0 = por %p2760_p13, %p2759_p11 }
 0x734   : > { %p2762_p6 = pnand %p2761_p0, %p2755_p4 }
 0x736   : > { %2765 = shalt.err (!%p2762_p6)
}
 0x737   : > { %s2843_s2 = smov 256   ;;  %s2844_s25 = smov 16  }
 0x738   : > { %2297 = dma.vmem_to_hbm [thread:$0]  (%p3443_p1), %s3325_s23, 512, %s3330_s21, %s3332_s20, %s2843_s2, %s2843_s2, %s2844_s25  }
 0x739 PF: > { %s3444_s17 = sld [smem:[#allocation31_spill]]  ;;  %s3445_s22 = sld [smem:[#allocation28_spill]] }
 0x73a   : > { %s3446_s4 = sld [smem:[#allocation35_spill]] }
 0x73f   : > { %p2359_p5 = scmp.ge.s32.totalorder %s3444_s17, 2  ;;  %s1628_s18 = sand.u32 1, %s3445_s22  }
 0x740   : > { %p3447_p9 = scmp.ne.s32.totalorder %s3446_s4, 0  ;;  %s1629_s16 = scalar_lea.sflag [#allocation4], %s1628_s18 }
 0x742   : > { %p2334_p12 = pnand %p2359_p5, %p3447_p9 }
 0x744   : > { %2807 = dma.done.wait (!%p2334_p12), %s1629_s16, 512  }
 0x745   : > { %2809 = vsyncadd (!%p2334_p12), %s1629_s16, 4294966784  ;;  %s3448_s21 = sld [smem:[#allocation32_spill]]  ;;  %s3449_s18 = sld [smem:[#allocation29_spill]] }
 0x746   : > { %s3450_s19 = sld [smem:[#allocation30_spill]]  ;;  %s3451_s20 = sld [smem:[#allocation33_spill]] }
 0x74b   : > { %p32_p10 = scmp.ge.s32.totalorder %s3448_s21, 4  }
 0x74d   :  { %34 = sbr.rel (!%p32_p10) target bundleno = 13 (0xd), region = 171 }
 0x754   :  { %1643 = vsyncpa [#allocation3], 1 }
 0x755   :  { %1645 = vsyncpa [#allocation3 + $0x1], 1 }
 0x756   :  { %1646 = vsyncpa [#allocation6], 1 }
 0x757   :  { %1647 = vsyncpa [#allocation9], 1 }
 0x758   :  { %1648 = vsyncpa [#allocation12], 1 }
 0x759   :  { %1649 = vsyncpa [#allocation15], 1 }
 0x75a   :  { %1650 = vsyncpa [#allocation18], 1 }
 0x75b   :  { %1651 = vsyncpa [#allocation4], 1 }
 0x75c   :  { %1653 = vsyncpa [#allocation4 + $0x1], 1 }

</bundles_post_ra>
